<compile_context>
chip_gen: v6e
topology: v6e:2x2x1
jax: 0.10.0
libtpu: 0.0.40
codegen_flags: <defaults>
</compile_context>

<pallas_src>
import math

import jax
import jax.numpy as jnp
from jax.experimental import pallas as pl
from jax.experimental.pallas import tpu as pltpu


# ----------------------------------------------------------------------------
# RoPE frequency table (equivalent of Frequencies(max_len, head_dim))
# ----------------------------------------------------------------------------
def frequencies(max_len, head_dim):
    inv = 1.0 / (10000.0 ** (jnp.arange(0, head_dim, 2, dtype=jnp.float32) / head_dim))
    pos = jnp.arange(max_len, dtype=jnp.float32)
    return (pos[:, None] * inv[None, :])[None]          # (1, max_len, head_dim//2)


def rope_tables(params, cond_len, audio_len):
    # cond positions use the conditional table; audio positions restart at 0
    # with the audio table (mirrors the reference passing both tables).
    ang = jnp.concatenate([params["cond_freq"][0, :cond_len],
                           params["audio_freq"][0, :audio_len]], axis=0)   # (T, hd/2)
    cos = jnp.concatenate([jnp.cos(ang), jnp.cos(ang)], axis=-1)[None]     # (1, T, hd)
    # signed sin: rotate-half sign folded into the table -> the in-kernel
    # rotate is a pure half rotation with no negate.
    ssin = jnp.concatenate([-jnp.sin(ang), jnp.sin(ang)], axis=-1)[None]   # (1, T, hd)
    return cos, ssin


# ----------------------------------------------------------------------------
# small helpers
# ----------------------------------------------------------------------------
def _pick_tile(n, pref):
    """Largest clean tile: `pref` if it divides n (and n is bigger), else n."""
    return pref if (n % pref == 0 and n > pref) else n


def _vmem_limit(needed_bytes):
    try:
        cap = int(pltpu.get_tpu_info().vmem_capacity_bytes)
    except Exception:
        cap = 64 << 20                       # conservative (v7x per-core VMEM)
    return int(min(max(needed_bytes, 32 << 20), int(cap * 0.85)))


def _const_spec(shape, single_buffer):
    """BlockSpec for a grid-invariant input (constant index_map)."""
    imap = lambda b, i: (0,) * len(shape)
    if single_buffer:
        # never re-fetched -> one VMEM buffer is enough (VMEM reclaim on v7x)
        return pl.BlockSpec(shape, imap, pipeline_mode=pl.Buffered(1))
    return pl.BlockSpec(shape, imap)


# ----------------------------------------------------------------------------
# Pallas kernel: one full Attention_Block (RMSNorm -> GQA+RoPE -> residual ->
# RMSNorm -> FFN), gridded over (batch, query tile).
# ----------------------------------------------------------------------------
def attention_block(x, cos, ssin, blk, cfg, single_buffer_weights=True):
    B, T, D = x.shape
    Hq, Hkv = cfg["num_heads_q"], cfg["num_heads_kv"]
    hd = cfg["head_dim"]
    half = hd // 2
    group = Hq // Hkv
    eps = float(cfg["eps"])
    Dff = cfg["ffn_multiplier"] * D
    scale = 1.0 / math.sqrt(hd)

    tq = _pick_tile(T, 256)          # query tile (= T at small shapes)
    nq = T // tq
    tdff = _pick_tile(Dff, 512)      # FFN hidden tile
    n_dff = Dff // tdff

    def kernel(xq_ref, xkv_ref, cq_ref, sq_ref, ck_ref, sk_ref,
               n1_ref, n2_ref, wq_ref, wk_ref, wv_ref, wo_ref,
               w1_ref, w2_ref, o_ref):
        xq = xq_ref[0]                        # (tq, D) f32 — this query tile
        xkv = xkv_ref[0]                      # (T, D)  f32 — full sequence (K/V source)

        # ---- RMSNorm 1 (f32 statistics), bf16 operands for the MXU ----
        n1 = n1_ref[...]
        xq_n = (xq * jax.lax.rsqrt(jnp.mean(xq * xq, -1, keepdims=True) + eps)
                * n1).astype(jnp.bfloat16)
        xkv_n = (xkv * jax.lax.rsqrt(jnp.mean(xkv * xkv, -1, keepdims=True) + eps)
                 * n1).astype(jnp.bfloat16)

        # ---- projections (bf16 in, f32 accumulation); scale folded into q ----
        q = jnp.dot(xq_n, wq_ref[...], preferred_element_type=jnp.float32) * scale
        k = jnp.dot(xkv_n, wk_ref[...], preferred_element_type=jnp.float32)
        v = jnp.dot(xkv_n, wv_ref[...], preferred_element_type=jnp.float32)

        # ---- RoPE: pure half-rotation, sign lives in the ssin table ----
        def rope(t, c, s):                     # t: (H, L, hd), c/s: (1, L, hd)
            rot = jnp.concatenate([t[..., half:], t[..., :half]], axis=-1)
            return t * c + rot * s

        q_h = rope(jnp.stack([q[:, h * hd:(h + 1) * hd] for h in range(Hq)], 0),
                   cq_ref[...], sq_ref[...])                        # (Hq, tq, hd) f32
        k_g = rope(jnp.stack([k[:, g * hd:(g + 1) * hd] for g in range(Hkv)], 0),
                   ck_ref[...], sk_ref[...]).astype(jnp.bfloat16)   # (Hkv, T, hd)
        v_g = jnp.stack([v[:, g * hd:(g + 1) * hd] for g in range(Hkv)],
                        0).astype(jnp.bfloat16)                     # (Hkv, T, hd)

        # ---- GQA without K/V replication: the query heads of each KV group are
        # stacked along rows, so the batched matmuls see M = group*tq against
        # the *unreplicated* K/V.
        q_s = jnp.stack(
            [jnp.concatenate([q_h[g * group + j] for j in range(group)], axis=0)
             for g in range(Hkv)], axis=0).astype(jnp.bfloat16)     # (Hkv, group*tq, hd)

        s = jnp.einsum('hqd,hkd->hqk', q_s, k_g,
                       preferred_element_type=jnp.float32)          # (Hkv, group*tq, T)

        # causal additive bias (global positions: this q tile starts at q_off)
        # TODO(synk): replace full-T keys with flash-style KV tiling + block skip.
        q_off = pl.program_id(1) * tq
        row = jax.lax.broadcasted_iota(jnp.int32, (tq, T), 0) + q_off
        col = jax.lax.broadcasted_iota(jnp.int32, (tq, T), 1)
        bias = jnp.where(col <= row, 0.0, -1e30)                     # (tq, T) f32
        s = s + jnp.concatenate([bias] * group, axis=0)[None]        # (1, group*tq, T)

        # softmax (f32 statistics, exact divide per review correctness note)
        m = jnp.max(s, -1, keepdims=True)
        p = jnp.exp(s - m)
        attn = (p / jnp.sum(p, -1, keepdims=True)).astype(jnp.bfloat16)

        ctx = jnp.einsum('hqk,hkd->hqd', attn, v_g,
                         preferred_element_type=jnp.float32)         # (Hkv, group*tq, hd)

        # reassemble (tq, Hq*hd) with a single lane concat (no scratch, no
        # per-head masked stores), then one wide output projection (K = Hq*hd).
        ctx_cat = jnp.concatenate(
            [ctx[g][j * tq:(j + 1) * tq, :]
             for g in range(Hkv) for j in range(group)],
            axis=-1).astype(jnp.bfloat16)                            # (tq, Hq*hd)
        o = jnp.dot(ctx_cat, wo_ref[...], preferred_element_type=jnp.float32)

        xr = xq + o                          # residual around attention (f32)

        # ---- RMSNorm 2 + FFN (no residual, as in the reference forward) ----
        n2 = n2_ref[...]
        x2 = (xr * jax.lax.rsqrt(jnp.mean(xr * xr, -1, keepdims=True) + eps)
              * n2).astype(jnp.bfloat16)

        # FFN tiled over Dff: (tq, tdff) hidden tile + f32 accumulator, so the
        # (tq, Dff) hidden never materializes and GELU overlaps the next matmul.
        acc = jnp.zeros((tq, D), jnp.float32)
        for j in range(n_dff):
            h = jnp.dot(x2, w1_ref[:, j * tdff:(j + 1) * tdff],
                        preferred_element_type=jnp.float32)
            # TODO(synk): PyTorch nn.GELU defaults to exact erf; tanh approx is
            # kept (the FFN definition is not part of the provided reference).
            h = jax.nn.gelu(h, approximate=True).astype(jnp.bfloat16)
            acc = acc + jnp.dot(h, w2_ref[j * tdff:(j + 1) * tdff, :],
                                preferred_element_type=jnp.float32)
        o_ref[0] = acc

    # ---- VMEM budget (actual live sets) & cost estimate ----
    wbytes = 2 * (D * Hq * hd + 2 * D * Hkv * hd + Hq * hd * D + 2 * D * Dff)
    wbuf = 1 if single_buffer_weights else 2
    stream = 4 * 2 * (2 * tq * D + T * D) + 4 * 2 * 2 * (tq + T) * hd
    live = 4 * (2 * Hq * tq * T               # scores s and p (f32)
                + tq * tdff + 3 * tq * D      # FFN tile, acc, residual, norm temp
                + 2 * (Hq * tq + 2 * Hkv * T) * hd)   # head stacks (+ roped copies)
    vmem_limit = _vmem_limit(wbytes * wbuf + stream + int(1.5 * live) + (4 << 20))

    flops = B * (2 * T * D * Hq * hd              # q projection
                 + nq * 2 * T * D * 2 * Hkv * hd  # k/v projections (per q tile)
                 + 4 * Hq * T * T * hd            # scores + PV
                 + 2 * T * Hq * hd * D            # output projection
                 + 4 * T * D * Dff)               # FFN
    transc = B * (Hq * T * T + T * Dff + 3 * T)
    bytes_accessed = B * 4 * T * D * (2 + nq) + wbytes + 4 * 2 * T * hd * 2

    sb = single_buffer_weights
    in_specs = [
        pl.BlockSpec((1, tq, D), lambda b, i: (b, i, 0)),    # x (query tile)
        pl.BlockSpec((1, T, D), lambda b, i: (b, 0, 0)),     # x (full, K/V source)
        pl.BlockSpec((1, tq, hd), lambda b, i: (0, i, 0)),   # cos (q tile)
        pl.BlockSpec((1, tq, hd), lambda b, i: (0, i, 0)),   # signed sin (q tile)
        _const_spec((1, T, hd), sb),                         # cos (full, K)
        _const_spec((1, T, hd), sb),                         # signed sin (full, K)
        _const_spec((1, D), sb),                             # norm1 weight
        _const_spec((1, D), sb),                             # norm2 weight
        _const_spec((D, Hq * hd), sb),                       # wq
        _const_spec((D, Hkv * hd), sb),                      # wk
        _const_spec((D, Hkv * hd), sb),                      # wv
        _const_spec((Hq * hd, D), sb),                       # wo
        _const_spec((D, Dff), sb),                           # w1
        _const_spec((Dff, D), sb),                           # w2
    ]

    return pl.pallas_call(
        kernel,
        out_shape=jax.ShapeDtypeStruct((B, T, D), jnp.float32),
        grid=(B, nq),
        in_specs=in_specs,
        out_specs=pl.BlockSpec((1, tq, D), lambda b, i: (b, i, 0)),
        compiler_params=pltpu.CompilerParams(
            dimension_semantics=("parallel", "parallel"),
            vmem_limit_bytes=vmem_limit),
        cost_estimate=pl.CostEstimate(flops=flops, transcendentals=transc,
                                      bytes_accessed=bytes_accessed),
    )(x, x, cos, ssin, cos, ssin, blk["n1"], blk["n2"], blk["wq"], blk["wk"],
      blk["wv"], blk["wo"], blk["w1"], blk["w2"])


# ----------------------------------------------------------------------------
# Pallas kernel: final RMSNorm + per-codebook heads fused into one lane-dense
# (T, C*V) matmul, gridded over (batch, fused-head tile).
# ----------------------------------------------------------------------------
def final_heads(x, norm_w, head_w, num_codebooks, eps, single_buffer_weights=True):
    B, T, D = x.shape
    CV = head_w.shape[1]
    C = num_codebooks
    V = CV // C
    eps = float(eps)
    tcv = _pick_tile(CV, 512)        # lane-dense tile of the fused head dim
    ncv = CV // tcv

    def kernel(x_ref, nw_ref, wh_ref, o_ref):
        xv = x_ref[0]
        xn = (xv * jax.lax.rsqrt(jnp.mean(xv * xv, -1, keepdims=True) + eps)
              * nw_ref[...]).astype(jnp.bfloat16)
        o_ref[0] = jnp.dot(xn, wh_ref[...], preferred_element_type=jnp.float32)

    vmem_limit = _vmem_limit(
        4 * 2 * (T * D + T * tcv) + 2 * 2 * D * tcv + 4 * T * D + (4 << 20))

    out = pl.pallas_call(
        kernel,
        out_shape=jax.ShapeDtypeStruct((B, T, CV), jnp.float32),
        grid=(B, ncv),
        in_specs=[
            pl.BlockSpec((1, T, D), lambda b, c: (b, 0, 0)),
            _const_spec((1, D), single_buffer_weights),
            pl.BlockSpec((D, tcv), lambda b, c: (0, c)),
        ],
        out_specs=pl.BlockSpec((1, T, tcv), lambda b, c: (b, 0, c)),
        compiler_params=pltpu.CompilerParams(
            dimension_semantics=("parallel", "parallel"),
            vmem_limit_bytes=vmem_limit),
        cost_estimate=pl.CostEstimate(
            flops=2 * B * T * D * CV,
            transcendentals=B * T * ncv,
            bytes_accessed=B * 4 * T * (D * ncv + CV) + 2 * D * CV),
    )(x, norm_w, head_w)
    # torch: stack([head(x).unsqueeze(2) for head in heads], dim=2) -> (B,T,C,1,V)
    return out.reshape(B, T, C, V)[:, :, :, None, :]


# ----------------------------------------------------------------------------
# Full Transformer forward (embedding gathers + RoPE table slicing are glue).
# ----------------------------------------------------------------------------
def transformer_forward(params, cfg, audio_tokens, conditional_input,
                        single_buffer_weights=True):
    cond_input = params["cond_emb"][conditional_input]          # (B, Lc, D)
    audio_input = params["cb_emb"][audio_tokens]                # (B, La, C, D)
    audio_input = jnp.sum(audio_input, axis=2)                  # (B, La, D)
    x = jnp.concatenate([cond_input, audio_input], axis=1)      # (B, T, D)
    cos, ssin = rope_tables(params, cond_input.shape[1], audio_input.shape[1])

    for blk in params["blocks"]:
        x = attention_block(x, cos, ssin, blk, cfg, single_buffer_weights)

    return final_heads(x, params["final_norm"], params["head_w"],
                       cfg["num_codebooks"], cfg["eps"], single_buffer_weights)


# ----------------------------------------------------------------------------
# Plain-JAX reference (same math, same bf16 cast points) — numeric cross-check.
# ----------------------------------------------------------------------------
def _reference_block(x, cos, ssin, blk, cfg):
    D = cfg["hidden_dims"]
    Hq, Hkv = cfg["num_heads_q"], cfg["num_heads_kv"]
    hd = cfg["head_dim"]
    half = hd // 2
    group = Hq // Hkv
    eps = float(cfg["eps"])
    scale = 1.0 / math.sqrt(hd)
    T = x.shape[0]
    bf16 = jnp.bfloat16

    def rms(v, w):
        return v * jax.lax.rsqrt(jnp.mean(v * v, -1, keepdims=True) + eps) * w

    xn = rms(x, blk["n1"]).astype(bf16)
    q = (jnp.dot(xn, blk["wq"], preferred_element_type=jnp.float32) * scale
         ).reshape(T, Hq, hd)
    k = jnp.dot(xn, blk["wk"], preferred_element_type=jnp.float32).reshape(T, Hkv, hd)
    v = jnp.dot(xn, blk["wv"], preferred_element_type=jnp.float32).reshape(T, Hkv, hd)

    def rope(t):
        rot = jnp.concatenate([t[..., half:], t[..., :half]], axis=-1)
        return t * cos[:, None, :] + rot * ssin[:, None, :]

    q = rope(q).astype(bf16)
    k = jnp.repeat(rope(k).astype(bf16), group, axis=1)          # (T, Hq, hd)
    v = jnp.repeat(v.astype(bf16), group, axis=1)

    s = jnp.einsum('qhd,khd->hqk', q, k, preferred_element_type=jnp.float32)
    row = jnp.arange(T)[:, None]
    col = jnp.arange(T)[None, :]
    s = jnp.where((col <= row)[None], s, -1e30)
    m = jnp.max(s, -1, keepdims=True)
    p = jnp.exp(s - m)
    attn = (p / jnp.sum(p, -1, keepdims=True)).astype(bf16)
    ctx = jnp.einsum('hqk,khd->qhd', attn, v, preferred_element_type=jnp.float32)
    o = jnp.dot(ctx.reshape(T, Hq * hd).astype(bf16), blk["wo"],
                preferred_element_type=jnp.float32)
    xr = x + o
    x2 = rms(xr, blk["n2"]).astype(bf16)
    h = jnp.dot(x2, blk["w1"], preferred_element_type=jnp.float32)
    h = jax.nn.gelu(h, approximate=True).astype(bf16)
    return jnp.dot(h, blk["w2"], preferred_element_type=jnp.float32)


def reference_forward(params, cfg, audio_tokens, conditional_input):
    cond_input = params["cond_emb"][conditional_input]
    audio_input = jnp.sum(params["cb_emb"][audio_tokens], axis=2)
    x = jnp.concatenate([cond_input, audio_input], axis=1)
    cos, ssin = rope_tables(params, cond_input.shape[1], audio_input.shape[1])
    cos2, ssin2 = cos[0], ssin[0]
    for blk in params["blocks"]:
        x = jax.vmap(lambda xe: _reference_block(xe, cos2, ssin2, blk, cfg))(x)
    eps = float(cfg["eps"])
    xn = (x * jax.lax.rsqrt(jnp.mean(x * x, -1, keepdims=True) + eps)
          * params["final_norm"]).astype(jnp.bfloat16)
    logits = jnp.einsum('btd,dv->btv', xn, params["head_w"],
                        preferred_element_type=jnp.float32)
    B, T = logits.shape[:2]
    C, V = cfg["num_codebooks"], cfg["num_cd_vectors"]
    return logits.reshape(B, T, C, V)[:, :, :, None, :]


# ----------------------------------------------------------------------------
# Deterministic parameter initialization (synthetic, not a checkpoint load).
# Weights stored bf16 (MXU-native); norm weights / embeddings kept f32.
# ----------------------------------------------------------------------------
def init_params(key, cfg):
    D = cfg["hidden_dims"]
    hd = cfg["head_dim"]
    Hq, Hkv = cfg["num_heads_q"], cfg["num_heads_kv"]
    Dff = cfg["ffn_multiplier"] * D
    V = cfg["num_cd_vectors"]
    C = cfg["num_codebooks"]
    keys = jax.random.split(key, 4 + cfg["num_blocks"])

    def nrm(k, shape, dtype=jnp.bfloat16):
        return (jax.random.normal(k, shape, jnp.float32) * 0.02).astype(dtype)

    params = {
        "cond_emb": nrm(keys[0], (cfg["vocab_size"], D), jnp.float32),
        "cb_emb": nrm(keys[1], (V, D), jnp.float32),
        "final_norm": jnp.ones((1, D), jnp.float32),
        "head_w": nrm(keys[2], (D, C * V)),     # fused heads, codebook-major columns
        "audio_freq": frequencies(cfg["max_audio_seq_length"], hd),
        "cond_freq": frequencies(cfg["max_cond_seq_length"], hd),
        "blocks": [],
    }
    for i in range(cfg["num_blocks"]):
        bk = jax.random.split(keys[4 + i], 6)
        params["blocks"].append({
            "n1": jnp.ones((1, D), jnp.float32),
            "n2": jnp.ones((1, D), jnp.float32),
            "wq": nrm(bk[0], (D, Hq * hd)),
            "wk": nrm(bk[1], (D, Hkv * hd)),
            "wv": nrm(bk[2], (D, Hkv * hd)),
            "wo": nrm(bk[3], (Hq * hd, D)),
            "w1": nrm(bk[4], (D, Dff)),
            "w2": nrm(bk[5], (Dff, D)),
        })
    return params


if __name__ == "__main__":
    cfg = dict(
        hidden_dims=32, num_heads_q=4, num_heads_kv=2, head_dim=8,
        seq_length=32, eps=1e-6, ffn_multiplier=4, num_blocks=2,
        vocab_size=50, num_cd_vectors=64, num_codebooks=2,
        max_audio_seq_length=16, max_cond_seq_length=16,
    )
    key = jax.random.PRNGKey(0)
    pkey, tkey, ckey = jax.random.split(key, 3)
    params = init_params(pkey, cfg)

    B, cond_len, audio_len = 2, 4, 8
    audio_tokens = jax.random.randint(
        tkey, (B, audio_len, cfg["num_codebooks"]), 0, cfg["num_cd_vectors"])
    conditional_input = jax.random.randint(
        ckey, (B, cond_len), 0, cfg["vocab_size"])

    def run_and_check(single_buffer_weights):
        out = transformer_forward(params, cfg, audio_tokens, conditional_input,
                                  single_buffer_weights=single_buffer_weights)
        out = jax.block_until_ready(out)
        expected = (B, cond_len + audio_len, cfg["num_codebooks"], 1,
                    cfg["num_cd_vectors"])
        assert out.shape == expected, (out.shape, expected)
        assert bool(jnp.all(jnp.isfinite(out)))
        ref = reference_forward(params, cfg, audio_tokens, conditional_input)
        num = jnp.sqrt(jnp.sum((out - ref) ** 2))
        den = jnp.sqrt(jnp.sum(ref ** 2)) + 1e-9
        rel = float(num / den)
        assert rel < 2e-2, f"mismatch vs reference: rel_err={rel}"
        return out

    try:
        out = run_and_check(single_buffer_weights=True)
    except Exception:
        # pl.Buffered(1) single-buffering of grid-invariant inputs is a VMEM
        # optimization only; fall back to default double buffering if rejected.
        out = run_and_check(single_buffer_weights=False)

    print("KERNEL_OK")
</pallas_src>

<mosaic_0001>
module attributes {stable_mosaic.version = 11 : i64} {
  func.func @kernel(%arg0: i32, %arg1: i32, %arg2: memref<1x12x32xf32, #tpu.memory_space<vmem>>, %arg3: memref<1x12x32xf32, #tpu.memory_space<vmem>>, %arg4: memref<1x12x8xf32, #tpu.memory_space<vmem>>, %arg5: memref<1x12x8xf32, #tpu.memory_space<vmem>>, %arg6: memref<1x12x8xf32, #tpu.memory_space<vmem>>, %arg7: memref<1x12x8xf32, #tpu.memory_space<vmem>>, %arg8: memref<1x32xf32, #tpu.memory_space<vmem>>, %arg9: memref<1x32xf32, #tpu.memory_space<vmem>>, %arg10: memref<32x32xbf16, #tpu.memory_space<vmem>>, %arg11: memref<32x16xbf16, #tpu.memory_space<vmem>>, %arg12: memref<32x16xbf16, #tpu.memory_space<vmem>>, %arg13: memref<32x32xbf16, #tpu.memory_space<vmem>>, %arg14: memref<32x128xbf16, #tpu.memory_space<vmem>>, %arg15: memref<128x32xbf16, #tpu.memory_space<vmem>>, %arg16: memref<1x12x32xf32, #tpu.memory_space<vmem>>) attributes {dimension_semantics = [#tpu.dimension_semantics<parallel>, #tpu.dimension_semantics<parallel>], iteration_bounds = array<i64: 2, 1>, scalar_prefetch = 0 : i64, scratch_operands = 0 : i64, tpu.core_type = #tpu.core_type<tc>, window_params = [{transform_indices = @transform_0, window_bounds = array<i64: 1, 12, 32>}, {transform_indices = @transform_1, window_bounds = array<i64: 1, 12, 32>}, {transform_indices = @transform_2, window_bounds = array<i64: 1, 12, 8>}, {transform_indices = @transform_3, window_bounds = array<i64: 1, 12, 8>}, {pipeline_mode = #tpu.pipeline_mode<synchronous>, transform_indices = @transform_4, window_bounds = array<i64: 1, 12, 8>}, {pipeline_mode = #tpu.pipeline_mode<synchronous>, transform_indices = @transform_5, window_bounds = array<i64: 1, 12, 8>}, {pipeline_mode = #tpu.pipeline_mode<synchronous>, transform_indices = @transform_6, window_bounds = array<i64: 1, 32>}, {pipeline_mode = #tpu.pipeline_mode<synchronous>, transform_indices = @transform_7, window_bounds = array<i64: 1, 32>}, {pipeline_mode = #tpu.pipeline_mode<synchronous>, transform_indices = @transform_8, window_bounds = array<i64: 32, 32>}, {pipeline_mode = #tpu.pipeline_mode<synchronous>, transform_indices = @transform_9, window_bounds = array<i64: 32, 16>}, {pipeline_mode = #tpu.pipeline_mode<synchronous>, transform_indices = @transform_10, window_bounds = array<i64: 32, 16>}, {pipeline_mode = #tpu.pipeline_mode<synchronous>, transform_indices = @transform_11, window_bounds = array<i64: 32, 32>}, {pipeline_mode = #tpu.pipeline_mode<synchronous>, transform_indices = @transform_12, window_bounds = array<i64: 32, 128>}, {pipeline_mode = #tpu.pipeline_mode<synchronous>, transform_indices = @transform_13, window_bounds = array<i64: 128, 32>}, {transform_indices = @transform_14, window_bounds = array<i64: 1, 12, 32>}]} {
    %c0 = arith.constant 0 : index
    %c0_0 = arith.constant 0 : index
    %c0_1 = arith.constant 0 : index
    %0 = vector.load %arg2[%c0, %c0_0, %c0_1] : memref<1x12x32xf32, #tpu.memory_space<vmem>>, vector<1x12x32xf32>
    %1 = vector.shape_cast %0 : vector<1x12x32xf32> to vector<12x32xf32>
    %c0_2 = arith.constant 0 : index
    %c0_3 = arith.constant 0 : index
    %c0_4 = arith.constant 0 : index
    %2 = vector.load %arg3[%c0_2, %c0_3, %c0_4] : memref<1x12x32xf32, #tpu.memory_space<vmem>>, vector<1x12x32xf32>
    %3 = vector.shape_cast %2 : vector<1x12x32xf32> to vector<12x32xf32>
    %c0_5 = arith.constant 0 : index
    %c0_6 = arith.constant 0 : index
    %4 = vector.load %arg8[%c0_5, %c0_6] : memref<1x32xf32, #tpu.memory_space<vmem>>, vector<1x32xf32>
    %5 = arith.mulf %1, %1 : vector<12x32xf32>
    %cst = arith.constant dense<0.000000e+00> : vector<12xf32>
    %6 = vector.multi_reduction <add>, %5, %cst [1] : vector<12x32xf32> to vector<12xf32>
    %7 = vector.shape_cast %6 : vector<12xf32> to vector<12x1xf32>
    %cst_7 = arith.constant 3.200000e+01 : f32
    %8 = vector.broadcast %cst_7 : f32 to vector<12x1xf32>
    %9 = arith.divf %7, %8 : vector<12x1xf32>
    %cst_8 = arith.constant 9.99999997E-7 : f32
    %10 = vector.broadcast %cst_8 : f32 to vector<12x1xf32>
    %11 = arith.addf %9, %10 : vector<12x1xf32>
    %12 = math.rsqrt %11 : vector<12x1xf32>
    %13 = vector.broadcast %12 : vector<12x1xf32> to vector<12x32xf32>
    %14 = arith.mulf %1, %13 : vector<12x32xf32>
    %15 = vector.broadcast %4 : vector<1x32xf32> to vector<12x32xf32>
    %16 = arith.mulf %14, %15 : vector<12x32xf32>
    %17 = arith.truncf %16 : vector<12x32xf32> to vector<12x32xbf16>
    %18 = arith.mulf %3, %3 : vector<12x32xf32>
    %cst_9 = arith.constant dense<0.000000e+00> : vector<12xf32>
    %19 = vector.multi_reduction <add>, %18, %cst_9 [1] : vector<12x32xf32> to vector<12xf32>
    %20 = vector.shape_cast %19 : vector<12xf32> to vector<12x1xf32>
    %cst_10 = arith.constant 3.200000e+01 : f32
    %21 = vector.broadcast %cst_10 : f32 to vector<12x1xf32>
    %22 = arith.divf %20, %21 : vector<12x1xf32>
    %cst_11 = arith.constant 9.99999997E-7 : f32
    %23 = vector.broadcast %cst_11 : f32 to vector<12x1xf32>
    %24 = arith.addf %22, %23 : vector<12x1xf32>
    %25 = math.rsqrt %24 : vector<12x1xf32>
    %26 = vector.broadcast %25 : vector<12x1xf32> to vector<12x32xf32>
    %27 = arith.mulf %3, %26 : vector<12x32xf32>
    %28 = vector.broadcast %4 : vector<1x32xf32> to vector<12x32xf32>
    %29 = arith.mulf %27, %28 : vector<12x32xf32>
    %30 = arith.truncf %29 : vector<12x32xf32> to vector<12x32xbf16>
    %c0_12 = arith.constant 0 : index
    %c0_13 = arith.constant 0 : index
    %31 = vector.load %arg10[%c0_12, %c0_13] : memref<32x32xbf16, #tpu.memory_space<vmem>>, vector<32x32xbf16>
    %cst_14 = arith.constant dense<0.000000e+00> : vector<12x32xf32>
    %32 = tpu.matmul %17, %31, %cst_14 {dimension_numbers = #tpu.dot_dimension_numbers<[1], [0], [0], [1], [0, 0, 1, 1], [], []>} : vector<12x32xbf16>, vector<32x32xbf16>, vector<12x32xf32> -> vector<12x32xf32>
    %cst_15 = arith.constant 0.353553385 : f32
    %33 = vector.broadcast %cst_15 : f32 to vector<12x32xf32>
    %34 = arith.mulf %32, %33 : vector<12x32xf32>
    %c0_16 = arith.constant 0 : index
    %c0_17 = arith.constant 0 : index
    %35 = vector.load %arg11[%c0_16, %c0_17] : memref<32x16xbf16, #tpu.memory_space<vmem>>, vector<32x16xbf16>
    %cst_18 = arith.constant dense<0.000000e+00> : vector<12x16xf32>
    %36 = tpu.matmul %30, %35, %cst_18 {dimension_numbers = #tpu.dot_dimension_numbers<[1], [0], [0], [1], [0, 0, 1, 1], [], []>} : vector<12x32xbf16>, vector<32x16xbf16>, vector<12x16xf32> -> vector<12x16xf32>
    %c0_19 = arith.constant 0 : index
    %c0_20 = arith.constant 0 : index
    %37 = vector.load %arg12[%c0_19, %c0_20] : memref<32x16xbf16, #tpu.memory_space<vmem>>, vector<32x16xbf16>
    %cst_21 = arith.constant dense<0.000000e+00> : vector<12x16xf32>
    %38 = tpu.matmul %30, %37, %cst_21 {dimension_numbers = #tpu.dot_dimension_numbers<[1], [0], [0], [1], [0, 0, 1, 1], [], []>} : vector<12x32xbf16>, vector<32x16xbf16>, vector<12x16xf32> -> vector<12x16xf32>
    %39 = vector.extract_strided_slice %34 {offsets = [0, 0], sizes = [12, 8], strides = [1, 1]} : vector<12x32xf32> to vector<12x8xf32>
    %40 = vector.extract_strided_slice %34 {offsets = [0, 8], sizes = [12, 8], strides = [1, 1]} : vector<12x32xf32> to vector<12x8xf32>
    %41 = vector.extract_strided_slice %34 {offsets = [0, 16], sizes = [12, 8], strides = [1, 1]} : vector<12x32xf32> to vector<12x8xf32>
    %42 = vector.extract_strided_slice %34 {offsets = [0, 24], sizes = [12, 8], strides = [1, 1]} : vector<12x32xf32> to vector<12x8xf32>
    %43 = vector.shape_cast %39 : vector<12x8xf32> to vector<1x12x8xf32>
    %44 = vector.shape_cast %40 : vector<12x8xf32> to vector<1x12x8xf32>
    %45 = vector.shape_cast %41 : vector<12x8xf32> to vector<1x12x8xf32>
    %46 = vector.shape_cast %42 : vector<12x8xf32> to vector<1x12x8xf32>
    %47 = tpu.concatenate %43, %44, %45, %46 in 0 : vector<1x12x8xf32>, vector<1x12x8xf32>, vector<1x12x8xf32>, vector<1x12x8xf32> -> vector<4x12x8xf32>
    %c0_22 = arith.constant 0 : index
    %c0_23 = arith.constant 0 : index
    %c0_24 = arith.constant 0 : index
    %48 = vector.load %arg4[%c0_22, %c0_23, %c0_24] : memref<1x12x8xf32, #tpu.memory_space<vmem>>, vector<1x12x8xf32>
    %c0_25 = arith.constant 0 : index
    %c0_26 = arith.constant 0 : index
    %c0_27 = arith.constant 0 : index
    %49 = vector.load %arg5[%c0_25, %c0_26, %c0_27] : memref<1x12x8xf32, #tpu.memory_space<vmem>>, vector<1x12x8xf32>
    %50 = vector.extract_strided_slice %47 {offsets = [0, 0, 4], sizes = [4, 12, 4], strides = [1, 1, 1]} : vector<4x12x8xf32> to vector<4x12x4xf32>
    %51 = vector.extract_strided_slice %47 {offsets = [0, 0, 0], sizes = [4, 12, 4], strides = [1, 1, 1]} : vector<4x12x8xf32> to vector<4x12x4xf32>
    %52 = tpu.concatenate %50, %51 in 2 : vector<4x12x4xf32>, vector<4x12x4xf32> -> vector<4x12x8xf32>
    %53 = vector.broadcast %48 : vector<1x12x8xf32> to vector<4x12x8xf32>
    %54 = arith.mulf %47, %53 : vector<4x12x8xf32>
    %55 = vector.broadcast %49 : vector<1x12x8xf32> to vector<4x12x8xf32>
    %56 = arith.mulf %52, %55 : vector<4x12x8xf32>
    %57 = arith.addf %54, %56 : vector<4x12x8xf32>
    %58 = vector.extract_strided_slice %36 {offsets = [0, 0], sizes = [12, 8], strides = [1, 1]} : vector<12x16xf32> to vector<12x8xf32>
    %59 = vector.extract_strided_slice %36 {offsets = [0, 8], sizes = [12, 8], strides = [1, 1]} : vector<12x16xf32> to vector<12x8xf32>
    %60 = vector.shape_cast %58 : vector<12x8xf32> to vector<1x12x8xf32>
    %61 = vector.shape_cast %59 : vector<12x8xf32> to vector<1x12x8xf32>
    %62 = tpu.concatenate %60, %61 in 0 : vector<1x12x8xf32>, vector<1x12x8xf32> -> vector<2x12x8xf32>
    %c0_28 = arith.constant 0 : index
    %c0_29 = arith.constant 0 : index
    %c0_30 = arith.constant 0 : index
    %63 = vector.load %arg6[%c0_28, %c0_29, %c0_30] : memref<1x12x8xf32, #tpu.memory_space<vmem>>, vector<1x12x8xf32>
    %c0_31 = arith.constant 0 : index
    %c0_32 = arith.constant 0 : index
    %c0_33 = arith.constant 0 : index
    %64 = vector.load %arg7[%c0_31, %c0_32, %c0_33] : memref<1x12x8xf32, #tpu.memory_space<vmem>>, vector<1x12x8xf32>
    %65 = vector.extract_strided_slice %62 {offsets = [0, 0, 4], sizes = [2, 12, 4], strides = [1, 1, 1]} : vector<2x12x8xf32> to vector<2x12x4xf32>
    %66 = vector.extract_strided_slice %62 {offsets = [0, 0, 0], sizes = [2, 12, 4], strides = [1, 1, 1]} : vector<2x12x8xf32> to vector<2x12x4xf32>
    %67 = tpu.concatenate %65, %66 in 2 : vector<2x12x4xf32>, vector<2x12x4xf32> -> vector<2x12x8xf32>
    %68 = vector.broadcast %63 : vector<1x12x8xf32> to vector<2x12x8xf32>
    %69 = arith.mulf %62, %68 : vector<2x12x8xf32>
    %70 = vector.broadcast %64 : vector<1x12x8xf32> to vector<2x12x8xf32>
    %71 = arith.mulf %67, %70 : vector<2x12x8xf32>
    %72 = arith.addf %69, %71 : vector<2x12x8xf32>
    %73 = arith.truncf %72 : vector<2x12x8xf32> to vector<2x12x8xbf16>
    %74 = vector.extract_strided_slice %38 {offsets = [0, 0], sizes = [12, 8], strides = [1, 1]} : vector<12x16xf32> to vector<12x8xf32>
    %75 = vector.extract_strided_slice %38 {offsets = [0, 8], sizes = [12, 8], strides = [1, 1]} : vector<12x16xf32> to vector<12x8xf32>
    %76 = vector.shape_cast %74 : vector<12x8xf32> to vector<1x12x8xf32>
    %77 = vector.shape_cast %75 : vector<12x8xf32> to vector<1x12x8xf32>
    %78 = tpu.concatenate %76, %77 in 0 : vector<1x12x8xf32>, vector<1x12x8xf32> -> vector<2x12x8xf32>
    %79 = arith.truncf %78 : vector<2x12x8xf32> to vector<2x12x8xbf16>
    %80 = vector.extract_strided_slice %57 {offsets = [0, 0, 0], sizes = [1, 12, 8], strides = [1, 1, 1]} : vector<4x12x8xf32> to vector<1x12x8xf32>
    %81 = vector.shape_cast %80 : vector<1x12x8xf32> to vector<12x8xf32>
    %82 = vector.extract_strided_slice %57 {offsets = [1, 0, 0], sizes = [1, 12, 8], strides = [1, 1, 1]} : vector<4x12x8xf32> to vector<1x12x8xf32>
    %83 = vector.shape_cast %82 : vector<1x12x8xf32> to vector<12x8xf32>
    %84 = tpu.concatenate %81, %83 in 0 : vector<12x8xf32>, vector<12x8xf32> -> vector<24x8xf32>
    %85 = vector.extract_strided_slice %57 {offsets = [2, 0, 0], sizes = [1, 12, 8], strides = [1, 1, 1]} : vector<4x12x8xf32> to vector<1x12x8xf32>
    %86 = vector.shape_cast %85 : vector<1x12x8xf32> to vector<12x8xf32>
    %87 = vector.extract_strided_slice %57 {offsets = [3, 0, 0], sizes = [1, 12, 8], strides = [1, 1, 1]} : vector<4x12x8xf32> to vector<1x12x8xf32>
    %88 = vector.shape_cast %87 : vector<1x12x8xf32> to vector<12x8xf32>
    %89 = tpu.concatenate %86, %88 in 0 : vector<12x8xf32>, vector<12x8xf32> -> vector<24x8xf32>
    %90 = vector.shape_cast %84 : vector<24x8xf32> to vector<1x24x8xf32>
    %91 = vector.shape_cast %89 : vector<24x8xf32> to vector<1x24x8xf32>
    %92 = tpu.concatenate %90, %91 in 0 : vector<1x24x8xf32>, vector<1x24x8xf32> -> vector<2x24x8xf32>
    %93 = arith.truncf %92 : vector<2x24x8xf32> to vector<2x24x8xbf16>
    "tpu.trace_start"() <{level = 10 : i32, message = "hqd,hkd->hqk"}> : () -> ()
    %cst_34 = arith.constant dense<0.000000e+00> : vector<2x24x12xf32>
    %94 = tpu.matmul %93, %73, %cst_34 {dimension_numbers = #tpu.dot_dimension_numbers<[2], [2], [1], [1], [0, 0, 0, 1, 1, 1], [0], [0]>} : vector<2x24x8xbf16>, vector<2x12x8xbf16>, vector<2x24x12xf32> -> vector<2x24x12xf32>
    "tpu.trace_stop"() : () -> ()
    %c12_i32 = arith.constant 12 : i32
    %95 = arith.muli %arg1, %c12_i32 : i32
    %96 = tpu.iota {dimensions = array<i32: 0>} : vector<12x12xi32>
    %97 = vector.broadcast %95 : i32 to vector<12x12xi32>
    %98 = arith.addi %96, %97 : vector<12x12xi32>
    %99 = tpu.iota {dimensions = array<i32: 1>} : vector<12x12xi32>
    %100 = arith.cmpi sle, %99, %98 : vector<12x12xi32>
    %cst_35 = arith.constant 0.000000e+00 : f32
    %cst_36 = arith.constant -1.000000e+30 : f32
    %101 = vector.broadcast %cst_35 : f32 to vector<12x12xf32>
    %102 = vector.broadcast %cst_36 : f32 to vector<12x12xf32>
    %103 = arith.select %100, %101, %102 : vector<12x12xi1>, vector<12x12xf32>
    %104 = tpu.concatenate %103, %103 in 0 : vector<12x12xf32>, vector<12x12xf32> -> vector<24x12xf32>
    %105 = vector.shape_cast %104 : vector<24x12xf32> to vector<1x24x12xf32>
    %106 = vector.broadcast %105 : vector<1x24x12xf32> to vector<2x24x12xf32>
    %107 = arith.addf %94, %106 : vector<2x24x12xf32>
    %cst_37 = arith.constant dense<0xFF800000> : vector<2x24xf32>
    %108 = vector.multi_reduction <maximumf>, %107, %cst_37 [2] : vector<2x24x12xf32> to vector<2x24xf32>
    %109 = vector.shape_cast %108 : vector<2x24xf32> to vector<2x24x1xf32>
    %110 = vector.broadcast %109 : vector<2x24x1xf32> to vector<2x24x12xf32>
    %111 = arith.subf %107, %110 : vector<2x24x12xf32>
    %112 = math.exp %111 : vector<2x24x12xf32>
    %cst_38 = arith.constant dense<0.000000e+00> : vector<2x24xf32>
    %113 = vector.multi_reduction <add>, %112, %cst_38 [2] : vector<2x24x12xf32> to vector<2x24xf32>
    %114 = vector.shape_cast %113 : vector<2x24xf32> to vector<2x24x1xf32>
    %115 = vector.broadcast %114 : vector<2x24x1xf32> to vector<2x24x12xf32>
    %116 = arith.divf %112, %115 : vector<2x24x12xf32>
    %117 = arith.truncf %116 : vector<2x24x12xf32> to vector<2x24x12xbf16>
    "tpu.trace_start"() <{level = 10 : i32, message = "hqk,hkd->hqd"}> : () -> ()
    %cst_39 = arith.constant dense<0.000000e+00> : vector<2x24x8xf32>
    %118 = tpu.matmul %117, %79, %cst_39 {dimension_numbers = #tpu.dot_dimension_numbers<[2], [1], [1], [2], [0, 0, 0, 1, 1, 2], [0], [0]>} : vector<2x24x12xbf16>, vector<2x12x8xbf16>, vector<2x24x8xf32> -> vector<2x24x8xf32>
    "tpu.trace_stop"() : () -> ()
    %119 = vector.extract_strided_slice %118 {offsets = [0, 0, 0], sizes = [1, 24, 8], strides = [1, 1, 1]} : vector<2x24x8xf32> to vector<1x24x8xf32>
    %120 = vector.shape_cast %119 : vector<1x24x8xf32> to vector<24x8xf32>
    %121 = vector.extract_strided_slice %120 {offsets = [0, 0], sizes = [12, 8], strides = [1, 1]} : vector<24x8xf32> to vector<12x8xf32>
    %122 = vector.extract_strided_slice %118 {offsets = [0, 0, 0], sizes = [1, 24, 8], strides = [1, 1, 1]} : vector<2x24x8xf32> to vector<1x24x8xf32>
    %123 = vector.shape_cast %122 : vector<1x24x8xf32> to vector<24x8xf32>
    %124 = vector.extract_strided_slice %123 {offsets = [12, 0], sizes = [12, 8], strides = [1, 1]} : vector<24x8xf32> to vector<12x8xf32>
    %125 = vector.extract_strided_slice %118 {offsets = [1, 0, 0], sizes = [1, 24, 8], strides = [1, 1, 1]} : vector<2x24x8xf32> to vector<1x24x8xf32>
    %126 = vector.shape_cast %125 : vector<1x24x8xf32> to vector<24x8xf32>
    %127 = vector.extract_strided_slice %126 {offsets = [0, 0], sizes = [12, 8], strides = [1, 1]} : vector<24x8xf32> to vector<12x8xf32>
    %128 = vector.extract_strided_slice %118 {offsets = [1, 0, 0], sizes = [1, 24, 8], strides = [1, 1, 1]} : vector<2x24x8xf32> to vector<1x24x8xf32>
    %129 = vector.shape_cast %128 : vector<1x24x8xf32> to vector<24x8xf32>
    %130 = vector.extract_strided_slice %129 {offsets = [12, 0], sizes = [12, 8], strides = [1, 1]} : vector<24x8xf32> to vector<12x8xf32>
    %131 = tpu.concatenate %121, %124, %127, %130 in 1 : vector<12x8xf32>, vector<12x8xf32>, vector<12x8xf32>, vector<12x8xf32> -> vector<12x32xf32>
    %132 = arith.truncf %131 : vector<12x32xf32> to vector<12x32xbf16>
    %c0_40 = arith.constant 0 : index
    %c0_41 = arith.constant 0 : index
    %133 = vector.load %arg13[%c0_40, %c0_41] : memref<32x32xbf16, #tpu.memory_space<vmem>>, vector<32x32xbf16>
    %cst_42 = arith.constant dense<0.000000e+00> : vector<12x32xf32>
    %134 = tpu.matmul %132, %133, %cst_42 {dimension_numbers = #tpu.dot_dimension_numbers<[1], [0], [0], [1], [0, 0, 1, 1], [], []>} : vector<12x32xbf16>, vector<32x32xbf16>, vector<12x32xf32> -> vector<12x32xf32>
    %135 = arith.addf %1, %134 : vector<12x32xf32>
    %c0_43 = arith.constant 0 : index
    %c0_44 = arith.constant 0 : index
    %136 = vector.load %arg9[%c0_43, %c0_44] : memref<1x32xf32, #tpu.memory_space<vmem>>, vector<1x32xf32>
    %137 = arith.mulf %135, %135 : vector<12x32xf32>
    %cst_45 = arith.constant dense<0.000000e+00> : vector<12xf32>
    %138 = vector.multi_reduction <add>, %137, %cst_45 [1] : vector<12x32xf32> to vector<12xf32>
    %139 = vector.shape_cast %138 : vector<12xf32> to vector<12x1xf32>
    %cst_46 = arith.constant 3.200000e+01 : f32
    %140 = vector.broadcast %cst_46 : f32 to vector<12x1xf32>
    %141 = arith.divf %139, %140 : vector<12x1xf32>
    %cst_47 = arith.constant 9.99999997E-7 : f32
    %142 = vector.broadcast %cst_47 : f32 to vector<12x1xf32>
    %143 = arith.addf %141, %142 : vector<12x1xf32>
    %144 = math.rsqrt %143 : vector<12x1xf32>
    %145 = vector.broadcast %144 : vector<12x1xf32> to vector<12x32xf32>
    %146 = arith.mulf %135, %145 : vector<12x32xf32>
    %147 = vector.broadcast %136 : vector<1x32xf32> to vector<12x32xf32>
    %148 = arith.mulf %146, %147 : vector<12x32xf32>
    %149 = arith.truncf %148 : vector<12x32xf32> to vector<12x32xbf16>
    %cst_48 = arith.constant 0.000000e+00 : f32
    %150 = vector.broadcast %cst_48 : f32 to vector<12x32xf32>
    %c0_49 = arith.constant 0 : index
    %c0_50 = arith.constant 0 : index
    %151 = vector.load %arg14[%c0_49, %c0_50] : memref<32x128xbf16, #tpu.memory_space<vmem>>, vector<32x128xbf16>
    %cst_51 = arith.constant dense<0.000000e+00> : vector<12x128xf32>
    %152 = tpu.matmul %149, %151, %cst_51 {dimension_numbers = #tpu.dot_dimension_numbers<[1], [0], [0], [1], [0, 0, 1, 1], [], []>} : vector<12x32xbf16>, vector<32x128xbf16>, vector<12x128xf32> -> vector<12x128xf32>
    %153 = arith.mulf %152, %152 : vector<12x128xf32>
    %154 = arith.mulf %152, %153 : vector<12x128xf32>
    %cst_52 = arith.constant 4.471500e-02 : f32
    %155 = vector.broadcast %cst_52 : f32 to vector<12x128xf32>
    %156 = arith.mulf %155, %154 : vector<12x128xf32>
    %157 = arith.addf %152, %156 : vector<12x128xf32>
    %cst_53 = arith.constant 0.797884583 : f32
    %158 = vector.broadcast %cst_53 : f32 to vector<12x128xf32>
    %159 = arith.mulf %158, %157 : vector<12x128xf32>
    %160 = math.tanh %159 : vector<12x128xf32>
    %cst_54 = arith.constant 1.000000e+00 : f32
    %161 = vector.broadcast %cst_54 : f32 to vector<12x128xf32>
    %162 = arith.addf %161, %160 : vector<12x128xf32>
    %cst_55 = arith.constant 5.000000e-01 : f32
    %163 = vector.broadcast %cst_55 : f32 to vector<12x128xf32>
    %164 = arith.mulf %163, %162 : vector<12x128xf32>
    %165 = arith.mulf %152, %164 : vector<12x128xf32>
    %166 = arith.truncf %165 : vector<12x128xf32> to vector<12x128xbf16>
    %c0_56 = arith.constant 0 : index
    %c0_57 = arith.constant 0 : index
    %167 = vector.load %arg15[%c0_56, %c0_57] : memref<128x32xbf16, #tpu.memory_space<vmem>>, vector<128x32xbf16>
    %cst_58 = arith.constant dense<0.000000e+00> : vector<12x32xf32>
    %168 = tpu.matmul %166, %167, %cst_58 {dimension_numbers = #tpu.dot_dimension_numbers<[1], [0], [0], [1], [0, 0, 1, 1], [], []>} : vector<12x128xbf16>, vector<128x32xbf16>, vector<12x32xf32> -> vector<12x32xf32>
    %169 = arith.addf %150, %168 : vector<12x32xf32>
    %c0_59 = arith.constant 0 : index
    %c0_60 = arith.constant 0 : index
    %c0_61 = arith.constant 0 : index
    %170 = vector.load %arg16[%c0_59, %c0_60, %c0_61] : memref<1x12x32xf32, #tpu.memory_space<vmem>>, vector<1x12x32xf32>
    %171 = vector.shape_cast %170 : vector<1x12x32xf32> to vector<12x32xf32>
    %172 = vector.shape_cast %169 : vector<12x32xf32> to vector<1x12x32xf32>
    tpu.vector_store %arg16[%c0_59, %c0_60, %c0_61], %172 {strides = array<i32>} : memref<1x12x32xf32, #tpu.memory_space<vmem>>, vector<1x12x32xf32>,
    return
  }
  func.func @transform_0(%arg0: i32, %arg1: i32) -> (i32, i32, i32) {
    %c0_i32 = arith.constant 0 : i32
    %c0_i32_0 = arith.constant 0 : i32
    return %arg0, %arg1, %c0_i32 : i32, i32, i32
  }
  func.func @transform_1(%arg0: i32, %arg1: i32) -> (i32, i32, i32) {
    %c0_i32 = arith.constant 0 : i32
    %c0_i32_0 = arith.constant 0 : i32
    %c0_i32_1 = arith.constant 0 : i32
    return %arg0, %c0_i32, %c0_i32_0 : i32, i32, i32
  }
  func.func @transform_2(%arg0: i32, %arg1: i32) -> (i32, i32, i32) {
    %c0_i32 = arith.constant 0 : i32
    %c0_i32_0 = arith.constant 0 : i32
    %c0_i32_1 = arith.constant 0 : i32
    return %c0_i32, %arg1, %c0_i32_0 : i32, i32, i32
  }
  func.func @transform_3(%arg0: i32, %arg1: i32) -> (i32, i32, i32) {
    %c0_i32 = arith.constant 0 : i32
    %c0_i32_0 = arith.constant 0 : i32
    %c0_i32_1 = arith.constant 0 : i32
    return %c0_i32, %arg1, %c0_i32_0 : i32, i32, i32
  }
  func.func @transform_4(%arg0: i32, %arg1: i32) -> (i32, i32, i32) {
    %c0_i32 = arith.constant 0 : i32
    %c0_i32_0 = arith.constant 0 : i32
    %c0_i32_1 = arith.constant 0 : i32
    %c0_i32_2 = arith.constant 0 : i32
    return %c0_i32, %c0_i32_0, %c0_i32_1 : i32, i32, i32
  }
  func.func @transform_5(%arg0: i32, %arg1: i32) -> (i32, i32, i32) {
    %c0_i32 = arith.constant 0 : i32
    %c0_i32_0 = arith.constant 0 : i32
    %c0_i32_1 = arith.constant 0 : i32
    %c0_i32_2 = arith.constant 0 : i32
    return %c0_i32, %c0_i32_0, %c0_i32_1 : i32, i32, i32
  }
  func.func @transform_6(%arg0: i32, %arg1: i32) -> (i32, i32) {
    %c0_i32 = arith.constant 0 : i32
    %c0_i32_0 = arith.constant 0 : i32
    %c0_i32_1 = arith.constant 0 : i32
    return %c0_i32, %c0_i32_0 : i32, i32
  }
  func.func @transform_7(%arg0: i32, %arg1: i32) -> (i32, i32) {
    %c0_i32 = arith.constant 0 : i32
    %c0_i32_0 = arith.constant 0 : i32
    %c0_i32_1 = arith.constant 0 : i32
    return %c0_i32, %c0_i32_0 : i32, i32
  }
  func.func @transform_8(%arg0: i32, %arg1: i32) -> (i32, i32) {
    %c0_i32 = arith.constant 0 : i32
    %c0_i32_0 = arith.constant 0 : i32
    %c0_i32_1 = arith.constant 0 : i32
    return %c0_i32, %c0_i32_0 : i32, i32
  }
  func.func @transform_9(%arg0: i32, %arg1: i32) -> (i32, i32) {
    %c0_i32 = arith.constant 0 : i32
    %c0_i32_0 = arith.constant 0 : i32
    %c0_i32_1 = arith.constant 0 : i32
    return %c0_i32, %c0_i32_0 : i32, i32
  }
  func.func @transform_10(%arg0: i32, %arg1: i32) -> (i32, i32) {
    %c0_i32 = arith.constant 0 : i32
    %c0_i32_0 = arith.constant 0 : i32
    %c0_i32_1 = arith.constant 0 : i32
    return %c0_i32, %c0_i32_0 : i32, i32
  }
  func.func @transform_11(%arg0: i32, %arg1: i32) -> (i32, i32) {
    %c0_i32 = arith.constant 0 : i32
    %c0_i32_0 = arith.constant 0 : i32
    %c0_i32_1 = arith.constant 0 : i32
    return %c0_i32, %c0_i32_0 : i32, i32
  }
  func.func @transform_12(%arg0: i32, %arg1: i32) -> (i32, i32) {
    %c0_i32 = arith.constant 0 : i32
    %c0_i32_0 = arith.constant 0 : i32
    %c0_i32_1 = arith.constant 0 : i32
    return %c0_i32, %c0_i32_0 : i32, i32
  }
  func.func @transform_13(%arg0: i32, %arg1: i32) -> (i32, i32) {
    %c0_i32 = arith.constant 0 : i32
    %c0_i32_0 = arith.constant 0 : i32
    %c0_i32_1 = arith.constant 0 : i32
    return %c0_i32, %c0_i32_0 : i32, i32
  }
  func.func @transform_14(%arg0: i32, %arg1: i32) -> (i32, i32, i32) {
    %c0_i32 = arith.constant 0 : i32
    %c0_i32_0 = arith.constant 0 : i32
    return %arg0, %arg1, %c0_i32 : i32, i32, i32
  }
}

module attributes {stable_mosaic.version = 11 : i64} {
  func.func @kernel(%arg0: i32, %arg1: i32, %arg2: memref<1x12x32xf32, #tpu.memory_space<vmem>>, %arg3: memref<1x12x32xf32, #tpu.memory_space<vmem>>, %arg4: memref<1x12x8xf32, #tpu.memory_space<vmem>>, %arg5: memref<1x12x8xf32, #tpu.memory_space<vmem>>, %arg6: memref<1x12x8xf32, #tpu.memory_space<vmem>>, %arg7: memref<1x12x8xf32, #tpu.memory_space<vmem>>, %arg8: memref<1x32xf32, #tpu.memory_space<vmem>>, %arg9: memref<1x32xf32, #tpu.memory_space<vmem>>, %arg10: memref<32x32xbf16, #tpu.memory_space<vmem>>, %arg11: memref<32x16xbf16, #tpu.memory_space<vmem>>, %arg12: memref<32x16xbf16, #tpu.memory_space<vmem>>, %arg13: memref<32x32xbf16, #tpu.memory_space<vmem>>, %arg14: memref<32x128xbf16, #tpu.memory_space<vmem>>, %arg15: memref<128x32xbf16, #tpu.memory_space<vmem>>, %arg16: memref<1x12x32xf32, #tpu.memory_space<vmem>>) attributes {dimension_semantics = [#tpu.dimension_semantics<parallel>, #tpu.dimension_semantics<parallel>], iteration_bounds = array<i64: 2, 1>, scalar_prefetch = 0 : i64, scratch_operands = 0 : i64, tpu.core_type = #tpu.core_type<tc>, window_params = [{transform_indices = @transform_0, window_bounds = array<i64: 1, 12, 32>}, {transform_indices = @transform_1, window_bounds = array<i64: 1, 12, 32>}, {transform_indices = @transform_2, window_bounds = array<i64: 1, 12, 8>}, {transform_indices = @transform_3, window_bounds = array<i64: 1, 12, 8>}, {pipeline_mode = #tpu.pipeline_mode<synchronous>, transform_indices = @transform_4, window_bounds = array<i64: 1, 12, 8>}, {pipeline_mode = #tpu.pipeline_mode<synchronous>, transform_indices = @transform_5, window_bounds = array<i64: 1, 12, 8>}, {pipeline_mode = #tpu.pipeline_mode<synchronous>, transform_indices = @transform_6, window_bounds = array<i64: 1, 32>}, {pipeline_mode = #tpu.pipeline_mode<synchronous>, transform_indices = @transform_7, window_bounds = array<i64: 1, 32>}, {pipeline_mode = #tpu.pipeline_mode<synchronous>, transform_indices = @transform_8, window_bounds = array<i64: 32, 32>}, {pipeline_mode = #tpu.pipeline_mode<synchronous>, transform_indices = @transform_9, window_bounds = array<i64: 32, 16>}, {pipeline_mode = #tpu.pipeline_mode<synchronous>, transform_indices = @transform_10, window_bounds = array<i64: 32, 16>}, {pipeline_mode = #tpu.pipeline_mode<synchronous>, transform_indices = @transform_11, window_bounds = array<i64: 32, 32>}, {pipeline_mode = #tpu.pipeline_mode<synchronous>, transform_indices = @transform_12, window_bounds = array<i64: 32, 128>}, {pipeline_mode = #tpu.pipeline_mode<synchronous>, transform_indices = @transform_13, window_bounds = array<i64: 128, 32>}, {transform_indices = @transform_14, window_bounds = array<i64: 1, 12, 32>}]} {
    %c0 = arith.constant 0 : index
    %c0_0 = arith.constant 0 : index
    %c0_1 = arith.constant 0 : index
    %0 = vector.load %arg2[%c0, %c0_0, %c0_1] : memref<1x12x32xf32, #tpu.memory_space<vmem>>, vector<1x12x32xf32>
    %1 = vector.shape_cast %0 : vector<1x12x32xf32> to vector<12x32xf32>
    %c0_2 = arith.constant 0 : index
    %c0_3 = arith.constant 0 : index
    %c0_4 = arith.constant 0 : index
    %2 = vector.load %arg3[%c0_2, %c0_3, %c0_4] : memref<1x12x32xf32, #tpu.memory_space<vmem>>, vector<1x12x32xf32>
    %3 = vector.shape_cast %2 : vector<1x12x32xf32> to vector<12x32xf32>
    %c0_5 = arith.constant 0 : index
    %c0_6 = arith.constant 0 : index
    %4 = vector.load %arg8[%c0_5, %c0_6] : memref<1x32xf32, #tpu.memory_space<vmem>>, vector<1x32xf32>
    %5 = arith.mulf %1, %1 : vector<12x32xf32>
    %cst = arith.constant dense<0.000000e+00> : vector<12xf32>
    %6 = vector.multi_reduction <add>, %5, %cst [1] : vector<12x32xf32> to vector<12xf32>
    %7 = vector.shape_cast %6 : vector<12xf32> to vector<12x1xf32>
    %cst_7 = arith.constant 3.200000e+01 : f32
    %8 = vector.broadcast %cst_7 : f32 to vector<12x1xf32>
    %9 = arith.divf %7, %8 : vector<12x1xf32>
    %cst_8 = arith.constant 9.99999997E-7 : f32
    %10 = vector.broadcast %cst_8 : f32 to vector<12x1xf32>
    %11 = arith.addf %9, %10 : vector<12x1xf32>
    %12 = math.rsqrt %11 : vector<12x1xf32>
    %13 = vector.broadcast %12 : vector<12x1xf32> to vector<12x32xf32>
    %14 = arith.mulf %1, %13 : vector<12x32xf32>
    %15 = vector.broadcast %4 : vector<1x32xf32> to vector<12x32xf32>
    %16 = arith.mulf %14, %15 : vector<12x32xf32>
    %17 = arith.truncf %16 : vector<12x32xf32> to vector<12x32xbf16>
    %18 = arith.mulf %3, %3 : vector<12x32xf32>
    %cst_9 = arith.constant dense<0.000000e+00> : vector<12xf32>
    %19 = vector.multi_reduction <add>, %18, %cst_9 [1] : vector<12x32xf32> to vector<12xf32>
    %20 = vector.shape_cast %19 : vector<12xf32> to vector<12x1xf32>
    %cst_10 = arith.constant 3.200000e+01 : f32
    %21 = vector.broadcast %cst_10 : f32 to vector<12x1xf32>
    %22 = arith.divf %20, %21 : vector<12x1xf32>
    %cst_11 = arith.constant 9.99999997E-7 : f32
    %23 = vector.broadcast %cst_11 : f32 to vector<12x1xf32>
    %24 = arith.addf %22, %23 : vector<12x1xf32>
    %25 = math.rsqrt %24 : vector<12x1xf32>
    %26 = vector.broadcast %25 : vector<12x1xf32> to vector<12x32xf32>
    %27 = arith.mulf %3, %26 : vector<12x32xf32>
    %28 = vector.broadcast %4 : vector<1x32xf32> to vector<12x32xf32>
    %29 = arith.mulf %27, %28 : vector<12x32xf32>
    %30 = arith.truncf %29 : vector<12x32xf32> to vector<12x32xbf16>
    %c0_12 = arith.constant 0 : index
    %c0_13 = arith.constant 0 : index
    %31 = vector.load %arg10[%c0_12, %c0_13] : memref<32x32xbf16, #tpu.memory_space<vmem>>, vector<32x32xbf16>
    %cst_14 = arith.constant dense<0.000000e+00> : vector<12x32xf32>
    %32 = tpu.matmul %17, %31, %cst_14 {dimension_numbers = #tpu.dot_dimension_numbers<[1], [0], [0], [1], [0, 0, 1, 1], [], []>} : vector<12x32xbf16>, vector<32x32xbf16>, vector<12x32xf32> -> vector<12x32xf32>
    %cst_15 = arith.constant 0.353553385 : f32
    %33 = vector.broadcast %cst_15 : f32 to vector<12x32xf32>
    %34 = arith.mulf %32, %33 : vector<12x32xf32>
    %c0_16 = arith.constant 0 : index
    %c0_17 = arith.constant 0 : index
    %35 = vector.load %arg11[%c0_16, %c0_17] : memref<32x16xbf16, #tpu.memory_space<vmem>>, vector<32x16xbf16>
    %cst_18 = arith.constant dense<0.000000e+00> : vector<12x16xf32>
    %36 = tpu.matmul %30, %35, %cst_18 {dimension_numbers = #tpu.dot_dimension_numbers<[1], [0], [0], [1], [0, 0, 1, 1], [], []>} : vector<12x32xbf16>, vector<32x16xbf16>, vector<12x16xf32> -> vector<12x16xf32>
    %c0_19 = arith.constant 0 : index
    %c0_20 = arith.constant 0 : index
    %37 = vector.load %arg12[%c0_19, %c0_20] : memref<32x16xbf16, #tpu.memory_space<vmem>>, vector<32x16xbf16>
    %cst_21 = arith.constant dense<0.000000e+00> : vector<12x16xf32>
    %38 = tpu.matmul %30, %37, %cst_21 {dimension_numbers = #tpu.dot_dimension_numbers<[1], [0], [0], [1], [0, 0, 1, 1], [], []>} : vector<12x32xbf16>, vector<32x16xbf16>, vector<12x16xf32> -> vector<12x16xf32>
    %39 = vector.extract_strided_slice %34 {offsets = [0, 0], sizes = [12, 8], strides = [1, 1]} : vector<12x32xf32> to vector<12x8xf32>
    %40 = vector.extract_strided_slice %34 {offsets = [0, 8], sizes = [12, 8], strides = [1, 1]} : vector<12x32xf32> to vector<12x8xf32>
    %41 = vector.extract_strided_slice %34 {offsets = [0, 16], sizes = [12, 8], strides = [1, 1]} : vector<12x32xf32> to vector<12x8xf32>
    %42 = vector.extract_strided_slice %34 {offsets = [0, 24], sizes = [12, 8], strides = [1, 1]} : vector<12x32xf32> to vector<12x8xf32>
    %43 = vector.shape_cast %39 : vector<12x8xf32> to vector<1x12x8xf32>
    %44 = vector.shape_cast %40 : vector<12x8xf32> to vector<1x12x8xf32>
    %45 = vector.shape_cast %41 : vector<12x8xf32> to vector<1x12x8xf32>
    %46 = vector.shape_cast %42 : vector<12x8xf32> to vector<1x12x8xf32>
    %47 = tpu.concatenate %43, %44, %45, %46 in 0 : vector<1x12x8xf32>, vector<1x12x8xf32>, vector<1x12x8xf32>, vector<1x12x8xf32> -> vector<4x12x8xf32>
    %c0_22 = arith.constant 0 : index
    %c0_23 = arith.constant 0 : index
    %c0_24 = arith.constant 0 : index
    %48 = vector.load %arg4[%c0_22, %c0_23, %c0_24] : memref<1x12x8xf32, #tpu.memory_space<vmem>>, vector<1x12x8xf32>
    %c0_25 = arith.constant 0 : index
    %c0_26 = arith.constant 0 : index
    %c0_27 = arith.constant 0 : index
    %49 = vector.load %arg5[%c0_25, %c0_26, %c0_27] : memref<1x12x8xf32, #tpu.memory_space<vmem>>, vector<1x12x8xf32>
    %50 = vector.extract_strided_slice %47 {offsets = [0, 0, 4], sizes = [4, 12, 4], strides = [1, 1, 1]} : vector<4x12x8xf32> to vector<4x12x4xf32>
    %51 = vector.extract_strided_slice %47 {offsets = [0, 0, 0], sizes = [4, 12, 4], strides = [1, 1, 1]} : vector<4x12x8xf32> to vector<4x12x4xf32>
    %52 = tpu.concatenate %50, %51 in 2 : vector<4x12x4xf32>, vector<4x12x4xf32> -> vector<4x12x8xf32>
    %53 = vector.broadcast %48 : vector<1x12x8xf32> to vector<4x12x8xf32>
    %54 = arith.mulf %47, %53 : vector<4x12x8xf32>
    %55 = vector.broadcast %49 : vector<1x12x8xf32> to vector<4x12x8xf32>
    %56 = arith.mulf %52, %55 : vector<4x12x8xf32>
    %57 = arith.addf %54, %56 : vector<4x12x8xf32>
    %58 = vector.extract_strided_slice %36 {offsets = [0, 0], sizes = [12, 8], strides = [1, 1]} : vector<12x16xf32> to vector<12x8xf32>
    %59 = vector.extract_strided_slice %36 {offsets = [0, 8], sizes = [12, 8], strides = [1, 1]} : vector<12x16xf32> to vector<12x8xf32>
    %60 = vector.shape_cast %58 : vector<12x8xf32> to vector<1x12x8xf32>
    %61 = vector.shape_cast %59 : vector<12x8xf32> to vector<1x12x8xf32>
    %62 = tpu.concatenate %60, %61 in 0 : vector<1x12x8xf32>, vector<1x12x8xf32> -> vector<2x12x8xf32>
    %c0_28 = arith.constant 0 : index
    %c0_29 = arith.constant 0 : index
    %c0_30 = arith.constant 0 : index
    %63 = vector.load %arg6[%c0_28, %c0_29, %c0_30] : memref<1x12x8xf32, #tpu.memory_space<vmem>>, vector<1x12x8xf32>
    %c0_31 = arith.constant 0 : index
    %c0_32 = arith.constant 0 : index
    %c0_33 = arith.constant 0 : index
    %64 = vector.load %arg7[%c0_31, %c0_32, %c0_33] : memref<1x12x8xf32, #tpu.memory_space<vmem>>, vector<1x12x8xf32>
    %65 = vector.extract_strided_slice %62 {offsets = [0, 0, 4], sizes = [2, 12, 4], strides = [1, 1, 1]} : vector<2x12x8xf32> to vector<2x12x4xf32>
    %66 = vector.extract_strided_slice %62 {offsets = [0, 0, 0], sizes = [2, 12, 4], strides = [1, 1, 1]} : vector<2x12x8xf32> to vector<2x12x4xf32>
    %67 = tpu.concatenate %65, %66 in 2 : vector<2x12x4xf32>, vector<2x12x4xf32> -> vector<2x12x8xf32>
    %68 = vector.broadcast %63 : vector<1x12x8xf32> to vector<2x12x8xf32>
    %69 = arith.mulf %62, %68 : vector<2x12x8xf32>
    %70 = vector.broadcast %64 : vector<1x12x8xf32> to vector<2x12x8xf32>
    %71 = arith.mulf %67, %70 : vector<2x12x8xf32>
    %72 = arith.addf %69, %71 : vector<2x12x8xf32>
    %73 = arith.truncf %72 : vector<2x12x8xf32> to vector<2x12x8xbf16>
    %74 = vector.extract_strided_slice %38 {offsets = [0, 0], sizes = [12, 8], strides = [1, 1]} : vector<12x16xf32> to vector<12x8xf32>
    %75 = vector.extract_strided_slice %38 {offsets = [0, 8], sizes = [12, 8], strides = [1, 1]} : vector<12x16xf32> to vector<12x8xf32>
    %76 = vector.shape_cast %74 : vector<12x8xf32> to vector<1x12x8xf32>
    %77 = vector.shape_cast %75 : vector<12x8xf32> to vector<1x12x8xf32>
    %78 = tpu.concatenate %76, %77 in 0 : vector<1x12x8xf32>, vector<1x12x8xf32> -> vector<2x12x8xf32>
    %79 = arith.truncf %78 : vector<2x12x8xf32> to vector<2x12x8xbf16>
    %80 = vector.extract_strided_slice %57 {offsets = [0, 0, 0], sizes = [1, 12, 8], strides = [1, 1, 1]} : vector<4x12x8xf32> to vector<1x12x8xf32>
    %81 = vector.shape_cast %80 : vector<1x12x8xf32> to vector<12x8xf32>
    %82 = vector.extract_strided_slice %57 {offsets = [1, 0, 0], sizes = [1, 12, 8], strides = [1, 1, 1]} : vector<4x12x8xf32> to vector<1x12x8xf32>
    %83 = vector.shape_cast %82 : vector<1x12x8xf32> to vector<12x8xf32>
    %84 = tpu.concatenate %81, %83 in 0 : vector<12x8xf32>, vector<12x8xf32> -> vector<24x8xf32>
    %85 = vector.extract_strided_slice %57 {offsets = [2, 0, 0], sizes = [1, 12, 8], strides = [1, 1, 1]} : vector<4x12x8xf32> to vector<1x12x8xf32>
    %86 = vector.shape_cast %85 : vector<1x12x8xf32> to vector<12x8xf32>
    %87 = vector.extract_strided_slice %57 {offsets = [3, 0, 0], sizes = [1, 12, 8], strides = [1, 1, 1]} : vector<4x12x8xf32> to vector<1x12x8xf32>
    %88 = vector.shape_cast %87 : vector<1x12x8xf32> to vector<12x8xf32>
    %89 = tpu.concatenate %86, %88 in 0 : vector<12x8xf32>, vector<12x8xf32> -> vector<24x8xf32>
    %90 = vector.shape_cast %84 : vector<24x8xf32> to vector<1x24x8xf32>
    %91 = vector.shape_cast %89 : vector<24x8xf32> to vector<1x24x8xf32>
    %92 = tpu.concatenate %90, %91 in 0 : vector<1x24x8xf32>, vector<1x24x8xf32> -> vector<2x24x8xf32>
    %93 = arith.truncf %92 : vector<2x24x8xf32> to vector<2x24x8xbf16>
    "tpu.trace_start"() <{level = 10 : i32, message = "hqd,hkd->hqk"}> : () -> ()
    %cst_34 = arith.constant dense<0.000000e+00> : vector<2x24x12xf32>
    %94 = tpu.matmul %93, %73, %cst_34 {dimension_numbers = #tpu.dot_dimension_numbers<[2], [2], [1], [1], [0, 0, 0, 1, 1, 1], [0], [0]>} : vector<2x24x8xbf16>, vector<2x12x8xbf16>, vector<2x24x12xf32> -> vector<2x24x12xf32>
    "tpu.trace_stop"() : () -> ()
    %c12_i32 = arith.constant 12 : i32
    %95 = arith.muli %arg1, %c12_i32 : i32
    %96 = tpu.iota {dimensions = array<i32: 0>} : vector<12x12xi32>
    %97 = vector.broadcast %95 : i32 to vector<12x12xi32>
    %98 = arith.addi %96, %97 : vector<12x12xi32>
    %99 = tpu.iota {dimensions = array<i32: 1>} : vector<12x12xi32>
    %100 = arith.cmpi sle, %99, %98 : vector<12x12xi32>
    %cst_35 = arith.constant 0.000000e+00 : f32
    %cst_36 = arith.constant -1.000000e+30 : f32
    %101 = vector.broadcast %cst_35 : f32 to vector<12x12xf32>
    %102 = vector.broadcast %cst_36 : f32 to vector<12x12xf32>
    %103 = arith.select %100, %101, %102 : vector<12x12xi1>, vector<12x12xf32>
    %104 = tpu.concatenate %103, %103 in 0 : vector<12x12xf32>, vector<12x12xf32> -> vector<24x12xf32>
    %105 = vector.shape_cast %104 : vector<24x12xf32> to vector<1x24x12xf32>
    %106 = vector.broadcast %105 : vector<1x24x12xf32> to vector<2x24x12xf32>
    %107 = arith.addf %94, %106 : vector<2x24x12xf32>
    %cst_37 = arith.constant dense<0xFF800000> : vector<2x24xf32>
    %108 = vector.multi_reduction <maximumf>, %107, %cst_37 [2] : vector<2x24x12xf32> to vector<2x24xf32>
    %109 = vector.shape_cast %108 : vector<2x24xf32> to vector<2x24x1xf32>
    %110 = vector.broadcast %109 : vector<2x24x1xf32> to vector<2x24x12xf32>
    %111 = arith.subf %107, %110 : vector<2x24x12xf32>
    %112 = math.exp %111 : vector<2x24x12xf32>
    %cst_38 = arith.constant dense<0.000000e+00> : vector<2x24xf32>
    %113 = vector.multi_reduction <add>, %112, %cst_38 [2] : vector<2x24x12xf32> to vector<2x24xf32>
    %114 = vector.shape_cast %113 : vector<2x24xf32> to vector<2x24x1xf32>
    %115 = vector.broadcast %114 : vector<2x24x1xf32> to vector<2x24x12xf32>
    %116 = arith.divf %112, %115 : vector<2x24x12xf32>
    %117 = arith.truncf %116 : vector<2x24x12xf32> to vector<2x24x12xbf16>
    "tpu.trace_start"() <{level = 10 : i32, message = "hqk,hkd->hqd"}> : () -> ()
    %cst_39 = arith.constant dense<0.000000e+00> : vector<2x24x8xf32>
    %118 = tpu.matmul %117, %79, %cst_39 {dimension_numbers = #tpu.dot_dimension_numbers<[2], [1], [1], [2], [0, 0, 0, 1, 1, 2], [0], [0]>} : vector<2x24x12xbf16>, vector<2x12x8xbf16>, vector<2x24x8xf32> -> vector<2x24x8xf32>
    "tpu.trace_stop"() : () -> ()
    %119 = vector.extract_strided_slice %118 {offsets = [0, 0, 0], sizes = [1, 24, 8], strides = [1, 1, 1]} : vector<2x24x8xf32> to vector<1x24x8xf32>
    %120 = vector.shape_cast %119 : vector<1x24x8xf32> to vector<24x8xf32>
    %121 = vector.extract_strided_slice %120 {offsets = [0, 0], sizes = [12, 8], strides = [1, 1]} : vector<24x8xf32> to vector<12x8xf32>
    %122 = vector.extract_strided_slice %118 {offsets = [0, 0, 0], sizes = [1, 24, 8], strides = [1, 1, 1]} : vector<2x24x8xf32> to vector<1x24x8xf32>
    %123 = vector.shape_cast %122 : vector<1x24x8xf32> to vector<24x8xf32>
    %124 = vector.extract_strided_slice %123 {offsets = [12, 0], sizes = [12, 8], strides = [1, 1]} : vector<24x8xf32> to vector<12x8xf32>
    %125 = vector.extract_strided_slice %118 {offsets = [1, 0, 0], sizes = [1, 24, 8], strides = [1, 1, 1]} : vector<2x24x8xf32> to vector<1x24x8xf32>
    %126 = vector.shape_cast %125 : vector<1x24x8xf32> to vector<24x8xf32>
    %127 = vector.extract_strided_slice %126 {offsets = [0, 0], sizes = [12, 8], strides = [1, 1]} : vector<24x8xf32> to vector<12x8xf32>
    %128 = vector.extract_strided_slice %118 {offsets = [1, 0, 0], sizes = [1, 24, 8], strides = [1, 1, 1]} : vector<2x24x8xf32> to vector<1x24x8xf32>
    %129 = vector.shape_cast %128 : vector<1x24x8xf32> to vector<24x8xf32>
    %130 = vector.extract_strided_slice %129 {offsets = [12, 0], sizes = [12, 8], strides = [1, 1]} : vector<24x8xf32> to vector<12x8xf32>
    %131 = tpu.concatenate %121, %124, %127, %130 in 1 : vector<12x8xf32>, vector<12x8xf32>, vector<12x8xf32>, vector<12x8xf32> -> vector<12x32xf32>
    %132 = arith.truncf %131 : vector<12x32xf32> to vector<12x32xbf16>
    %c0_40 = arith.constant 0 : index
    %c0_41 = arith.constant 0 : index
    %133 = vector.load %arg13[%c0_40, %c0_41] : memref<32x32xbf16, #tpu.memory_space<vmem>>, vector<32x32xbf16>
    %cst_42 = arith.constant dense<0.000000e+00> : vector<12x32xf32>
    %134 = tpu.matmul %132, %133, %cst_42 {dimension_numbers = #tpu.dot_dimension_numbers<[1], [0], [0], [1], [0, 0, 1, 1], [], []>} : vector<12x32xbf16>, vector<32x32xbf16>, vector<12x32xf32> -> vector<12x32xf32>
    %135 = arith.addf %1, %134 : vector<12x32xf32>
    %c0_43 = arith.constant 0 : index
    %c0_44 = arith.constant 0 : index
    %136 = vector.load %arg9[%c0_43, %c0_44] : memref<1x32xf32, #tpu.memory_space<vmem>>, vector<1x32xf32>
    %137 = arith.mulf %135, %135 : vector<12x32xf32>
    %cst_45 = arith.constant dense<0.000000e+00> : vector<12xf32>
    %138 = vector.multi_reduction <add>, %137, %cst_45 [1] : vector<12x32xf32> to vector<12xf32>
    %139 = vector.shape_cast %138 : vector<12xf32> to vector<12x1xf32>
    %cst_46 = arith.constant 3.200000e+01 : f32
    %140 = vector.broadcast %cst_46 : f32 to vector<12x1xf32>
    %141 = arith.divf %139, %140 : vector<12x1xf32>
    %cst_47 = arith.constant 9.99999997E-7 : f32
    %142 = vector.broadcast %cst_47 : f32 to vector<12x1xf32>
    %143 = arith.addf %141, %142 : vector<12x1xf32>
    %144 = math.rsqrt %143 : vector<12x1xf32>
    %145 = vector.broadcast %144 : vector<12x1xf32> to vector<12x32xf32>
    %146 = arith.mulf %135, %145 : vector<12x32xf32>
    %147 = vector.broadcast %136 : vector<1x32xf32> to vector<12x32xf32>
    %148 = arith.mulf %146, %147 : vector<12x32xf32>
    %149 = arith.truncf %148 : vector<12x32xf32> to vector<12x32xbf16>
    %cst_48 = arith.constant 0.000000e+00 : f32
    %150 = vector.broadcast %cst_48 : f32 to vector<12x32xf32>
    %c0_49 = arith.constant 0 : index
    %c0_50 = arith.constant 0 : index
    %151 = vector.load %arg14[%c0_49, %c0_50] : memref<32x128xbf16, #tpu.memory_space<vmem>>, vector<32x128xbf16>
    %cst_51 = arith.constant dense<0.000000e+00> : vector<12x128xf32>
    %152 = tpu.matmul %149, %151, %cst_51 {dimension_numbers = #tpu.dot_dimension_numbers<[1], [0], [0], [1], [0, 0, 1, 1], [], []>} : vector<12x32xbf16>, vector<32x128xbf16>, vector<12x128xf32> -> vector<12x128xf32>
    %153 = arith.mulf %152, %152 : vector<12x128xf32>
    %154 = arith.mulf %152, %153 : vector<12x128xf32>
    %cst_52 = arith.constant 4.471500e-02 : f32
    %155 = vector.broadcast %cst_52 : f32 to vector<12x128xf32>
    %156 = arith.mulf %155, %154 : vector<12x128xf32>
    %157 = arith.addf %152, %156 : vector<12x128xf32>
    %cst_53 = arith.constant 0.797884583 : f32
    %158 = vector.broadcast %cst_53 : f32 to vector<12x128xf32>
    %159 = arith.mulf %158, %157 : vector<12x128xf32>
    %160 = math.tanh %159 : vector<12x128xf32>
    %cst_54 = arith.constant 1.000000e+00 : f32
    %161 = vector.broadcast %cst_54 : f32 to vector<12x128xf32>
    %162 = arith.addf %161, %160 : vector<12x128xf32>
    %cst_55 = arith.constant 5.000000e-01 : f32
    %163 = vector.broadcast %cst_55 : f32 to vector<12x128xf32>
    %164 = arith.mulf %163, %162 : vector<12x128xf32>
    %165 = arith.mulf %152, %164 : vector<12x128xf32>
    %166 = arith.truncf %165 : vector<12x128xf32> to vector<12x128xbf16>
    %c0_56 = arith.constant 0 : index
    %c0_57 = arith.constant 0 : index
    %167 = vector.load %arg15[%c0_56, %c0_57] : memref<128x32xbf16, #tpu.memory_space<vmem>>, vector<128x32xbf16>
    %cst_58 = arith.constant dense<0.000000e+00> : vector<12x32xf32>
    %168 = tpu.matmul %166, %167, %cst_58 {dimension_numbers = #tpu.dot_dimension_numbers<[1], [0], [0], [1], [0, 0, 1, 1], [], []>} : vector<12x128xbf16>, vector<128x32xbf16>, vector<12x32xf32> -> vector<12x32xf32>
    %169 = arith.addf %150, %168 : vector<12x32xf32>
    %c0_59 = arith.constant 0 : index
    %c0_60 = arith.constant 0 : index
    %c0_61 = arith.constant 0 : index
    %170 = vector.load %arg16[%c0_59, %c0_60, %c0_61] : memref<1x12x32xf32, #tpu.memory_space<vmem>>, vector<1x12x32xf32>
    %171 = vector.shape_cast %170 : vector<1x12x32xf32> to vector<12x32xf32>
    %172 = vector.shape_cast %169 : vector<12x32xf32> to vector<1x12x32xf32>
    tpu.vector_store %arg16[%c0_59, %c0_60, %c0_61], %172 {strides = array<i32>} : memref<1x12x32xf32, #tpu.memory_space<vmem>>, vector<1x12x32xf32>,
    return
  }
  func.func @transform_0(%arg0: i32, %arg1: i32) -> (i32, i32, i32) {
    %c0_i32 = arith.constant 0 : i32
    %c0_i32_0 = arith.constant 0 : i32
    return %arg0, %arg1, %c0_i32 : i32, i32, i32
  }
  func.func @transform_1(%arg0: i32, %arg1: i32) -> (i32, i32, i32) {
    %c0_i32 = arith.constant 0 : i32
    %c0_i32_0 = arith.constant 0 : i32
    %c0_i32_1 = arith.constant 0 : i32
    return %arg0, %c0_i32, %c0_i32_0 : i32, i32, i32
  }
  func.func @transform_2(%arg0: i32, %arg1: i32) -> (i32, i32, i32) {
    %c0_i32 = arith.constant 0 : i32
    %c0_i32_0 = arith.constant 0 : i32
    %c0_i32_1 = arith.constant 0 : i32
    return %c0_i32, %arg1, %c0_i32_0 : i32, i32, i32
  }
  func.func @transform_3(%arg0: i32, %arg1: i32) -> (i32, i32, i32) {
    %c0_i32 = arith.constant 0 : i32
    %c0_i32_0 = arith.constant 0 : i32
    %c0_i32_1 = arith.constant 0 : i32
    return %c0_i32, %arg1, %c0_i32_0 : i32, i32, i32
  }
  func.func @transform_4(%arg0: i32, %arg1: i32) -> (i32, i32, i32) {
    %c0_i32 = arith.constant 0 : i32
    %c0_i32_0 = arith.constant 0 : i32
    %c0_i32_1 = arith.constant 0 : i32
    %c0_i32_2 = arith.constant 0 : i32
    return %c0_i32, %c0_i32_0, %c0_i32_1 : i32, i32, i32
  }
  func.func @transform_5(%arg0: i32, %arg1: i32) -> (i32, i32, i32) {
    %c0_i32 = arith.constant 0 : i32
    %c0_i32_0 = arith.constant 0 : i32
    %c0_i32_1 = arith.constant 0 : i32
    %c0_i32_2 = arith.constant 0 : i32
    return %c0_i32, %c0_i32_0, %c0_i32_1 : i32, i32, i32
  }
  func.func @transform_6(%arg0: i32, %arg1: i32) -> (i32, i32) {
    %c0_i32 = arith.constant 0 : i32
    %c0_i32_0 = arith.constant 0 : i32
    %c0_i32_1 = arith.constant 0 : i32
    return %c0_i32, %c0_i32_0 : i32, i32
  }
  func.func @transform_7(%arg0: i32, %arg1: i32) -> (i32, i32) {
    %c0_i32 = arith.constant 0 : i32
    %c0_i32_0 = arith.constant 0 : i32
    %c0_i32_1 = arith.constant 0 : i32
    return %c0_i32, %c0_i32_0 : i32, i32
  }
  func.func @transform_8(%arg0: i32, %arg1: i32) -> (i32, i32) {
    %c0_i32 = arith.constant 0 : i32
    %c0_i32_0 = arith.constant 0 : i32
    %c0_i32_1 = arith.constant 0 : i32
    return %c0_i32, %c0_i32_0 : i32, i32
  }
  func.func @transform_9(%arg0: i32, %arg1: i32) -> (i32, i32) {
    %c0_i32 = arith.constant 0 : i32
    %c0_i32_0 = arith.constant 0 : i32
    %c0_i32_1 = arith.constant 0 : i32
    return %c0_i32, %c0_i32_0 : i32, i32
  }
  func.func @transform_10(%arg0: i32, %arg1: i32) -> (i32, i32) {
    %c0_i32 = arith.constant 0 : i32
    %c0_i32_0 = arith.constant 0 : i32
    %c0_i32_1 = arith.constant 0 : i32
    return %c0_i32, %c0_i32_0 : i32, i32
  }
  func.func @transform_11(%arg0: i32, %arg1: i32) -> (i32, i32) {
    %c0_i32 = arith.constant 0 : i32
    %c0_i32_0 = arith.constant 0 : i32
    %c0_i32_1 = arith.constant 0 : i32
    return %c0_i32, %c0_i32_0 : i32, i32
  }
  func.func @transform_12(%arg0: i32, %arg1: i32) -> (i32, i32) {
    %c0_i32 = arith.constant 0 : i32
    %c0_i32_0 = arith.constant 0 : i32
    %c0_i32_1 = arith.constant 0 : i32
    return %c0_i32, %c0_i32_0 : i32, i32
  }
  func.func @transform_13(%arg0: i32, %arg1: i32) -> (i32, i32) {
    %c0_i32 = arith.constant 0 : i32
    %c0_i32_0 = arith.constant 0 : i32
    %c0_i32_1 = arith.constant 0 : i32
    return %c0_i32, %c0_i32_0 : i32, i32
  }
  func.func @transform_14(%arg0: i32, %arg1: i32) -> (i32, i32, i32) {
    %c0_i32 = arith.constant 0 : i32
    %c0_i32_0 = arith.constant 0 : i32
    return %arg0, %arg1, %c0_i32 : i32, i32, i32
  }
}

</mosaic_0001>

<bundles_post_ra>
// kernel: tpu_custom_call.1
= control target key start
LH: loop header
LB: loop body
LE: loop exit
PB: predicated region body
PF: predicated region fallthrough
CT: control target
= control target key end

     0   :  { %s2154_s29 = smov 0   ;;  %s2156_s30 = smov 0   ;;  %s2513_s0 = inlined_call_operand.vmem [shape: f32[2,12,32], index: 0, kind: input, shape index: {}]   ;;  %s2514_s1 = inlined_call_operand.vmem [shape: f32[2,12,32], index: 1, kind: input, shape index: {}]   ;;  %s2515_s2 = inlined_call_operand.vmem [shape: f32[1,12,8], index: 2, kind: input, shape index: {}]   ;;  %s2516_s3 = inlined_call_operand.vmem [shape: f32[1,12,8], index: 3, kind: input, shape index: {}]   ;;  %s2517_s4 = inlined_call_operand.vmem [shape: f32[1,12,8], index: 4, kind: input, shape index: {}]   ;;  %s2518_s5 = inlined_call_operand.vmem [shape: f32[1,12,8], index: 5, kind: input, shape index: {}]   ;;  %s2519_s6 = inlined_call_operand.vmem [shape: f32[1,32], index: 6, kind: input, shape index: {}]   ;;  %s2520_s7 = inlined_call_operand.vmem [shape: f32[1,32], index: 7, kind: input, shape index: {}]   ;;  %s2521_s8 = inlined_call_operand.vmem [shape: bf16[32,32], index: 8, kind: input, shape index: {}]   ;;  %s2522_s9 = inlined_call_operand.vmem [shape: bf16[32,16], index: 9, kind: input, shape index: {}]   ;;  %s2523_s10 = inlined_call_operand.vmem [shape: bf16[32,16], index: 10, kind: input, shape index: {}]   ;;  %s2524_s11 = inlined_call_operand.vmem [shape: bf16[32,32], index: 11, kind: input, shape index: {}]   ;;  %s2525_s12 = inlined_call_operand.vmem [shape: bf16[32,128], index: 12, kind: input, shape index: {}]   ;;  %s2526_s13 = inlined_call_operand.vmem [shape: bf16[128,32], index: 13, kind: input, shape index: {}]   ;;  %s2527_s14 = inlined_call_operand.vmem [shape: f32[2,12,32], index: 14, kind: output, shape index: {}]  }
   0x1   :  { %s2158_s15 = smov 0  }
   0x2 LB: > { %s36_s16 = sadd.s32 1, %s2062_s30  ;;  %p1762_p0 = scmp.ge.s32.totalorder %s2066_s15, 1  ;;  %s2066_s15 = sphi %s2158_s15, %s24_s15   ;;  %s2062_s30 = sphi %s2156_s30, %s2529_s30   ;;  %s2058_s29 = sphi %s2154_s29, %s2528_s29  }
   0x3   : > { %p38_p1 = scmp.ge.s32.totalorder %s36_s16, 2  ;;  %p465_p2 = scmp.lt.s32.totalorder %s2066_s15, 3 }
   0x5   : > { %s2531_s16 = smov (%p38_p1, %s36_s16), 0  ;;  %p466_p3 = pnand %p1762_p0, %p465_p2 }
   0x6   : > { %p535_p4 = scmp.lt.s32.totalorder (!%p466_p3), %s2058_s29, 1  ;;  %s2070_s26 = smov (!%p466_p3), 120  }
   0x7   : > { %469 = sbr.rel (%p466_p3) target bundleno = 2294 (0x8f6), region = 76  ;;  %s2071_s27 = smov (!%p466_p3), 104  }
   0x8   : > { %s2072_s28 = smov (!%p466_p3), 112   ;;  %s2074_s18 = smov (!%p466_p3), 4  }
   0x9   : > { %s2078_s19 = smov (!%p466_p3), 24  }
   0xc   : > { %s2533_s29 = smov (!%p535_p4, %s2058_s29), 1  ;;  %vm579_vm0 = vcmask 261120   ;;  %vm583_vm1 = vcmask 257024   ;;  %v1986_v12 = vld [vmem:[%s2521_s8 + $0x8] sm:$0xff]   ;;  %v2068_v13 = vmov 0.0   ;;  %v1987_v14 = vld [vmem:[%s2521_s8] sm:$0xff]  }
   0xd   : > { %s2172_s17 = sshll.u32 %s2533_s29, 4  ;;  %1843 = vmatprep.subr.bf16.mxu0 %v2068_v13  ;;  %vm2069_vm2 = vmmov 0   ;;  %v1769_v30 = vld [vmem:[%s2519_s6] ss:$0 sm:$0xff]  ;;  %v1988_v36 = vld [vmem:[%s2522_s9 + $0x8] sm:$0xff]   ;;  %s2073_s29 = smov 124  }
   0xe   : > { %s542_s20 = scalar_lea.vmem %s2513_s0, %s2172_s17  ;;  %s548_s23 = scalar_lea.vmem %s2514_s1, %s2172_s17  ;;  %1844 = vmatpush3.bf16.msra.mxu0 %v1986_v12  ;;  %1847 = vmatprep.mubr.msk.bf16.mxu0 %vm2069_vm2, %v2068_v13  ;;  %v1989_v40 = vld [vmem:[%s2522_s9] sm:$0xff]   ;;  %v1990_v43 = vld [vmem:[%s2523_s10 + $0x8] sm:$0xff]   ;;  %vm875_vm3 = vcmask 31744   ;;  %vm1014_vm4 = vcmask 64512   ;;  %vm1206_vm5 = vcmask 1045504   ;;  %vm974_vm6 = vcmask 1043456  }
   0xf   : > { %v2182_v0 = vld [vmem:[%s542_s20] sm:$0xff]  ;;  %v2184_v2 = vld [vmem:[%s542_s20 + $0x8] sm:$0xf]  ;;  %1845 = vmatprep.subr.bf16.mxu0 %v2068_v13  ;;  %vm1129_vm9 = vcmask 97280   ;;  %vm1346_vm10 = vcmask 130048   ;;  %vm1349_vm11 = vcmask 195584   ;;  %s569_s20 = scalar_lea.vmem %s2527_s14, %s2172_s17 }
  0x10   : > { %v574_v1 = vld [vmem:[%s548_s23] sm:$0xff]  ;;  %v577_v3 = vmul.f32 %v2182_v0, %v2182_v0  ;;  %v578_v5 = vmul.f32 %v2184_v2, %v2184_v2  ;;  %v575_v6 = vld [vmem:[%s548_s23 + $0x8] sm:$0xf] }
  0x11   : > { %v605_v4 = vmul.f32 %v574_v1, %v574_v1  ;;  %v606_v7 = vmul.f32 %v575_v6, %v575_v6  ;;  %v1991_v45 = vld [vmem:[%s2523_s10] sm:$0xff]  }
  0x12   : > { %v580_v8 = vsel %vm579_vm0, %v577_v3, 0.0  ;;  %v584_v10 = vsel %vm583_vm1, %v578_v5, 0.0  ;;  %1846 = vmatpush3.bf16.msra.mxu0 %v1987_v14  ;;  %v2311_v14 = vld [vmem:[%s2517_s4] sm:$0xff] }
  0x13   : > { %v607_v9 = vsel %vm579_vm0, %v605_v4, 0.0  ;;  %581 = vadd.xlane.f32.xlu0 %v580_v8  ;;  %v610_v11 = vsel %vm583_vm1, %v606_v7, 0.0  ;;  %1851 = vmatprep.subr.bf16.mxu0 %v2068_v13 }
  0x14   : > { %608 = vadd.xlane.f32.xlu1 %v607_v9 }
  0x17   : > { %585 = vadd.xlane.f32.xlu0 %v584_v10 }
  0x18   : > { %611 = vadd.xlane.f32.xlu1 %v610_v11  ;;  %v2303_v11 = vld [vmem:[%s2518_s5] sm:$0xff] }
  0x9c   : > { %v582_v15 = vpop.xlane.xlu0 %581 }
  0x9d   : > { %v609_v16 = vpop.xlane.xlu1 %608  ;;  %v588_v17 = vmul.f32 0.03125, %v582_v15  ;;  %v2316_v15 = vld [vmem:[%s2517_s4 + $0x8] sm:$0xf] }
  0x9e   : > { %v613_v18 = vmul.f32 0.03125, %v609_v16  ;;  %v2321_v16 = vld [vmem:[%s2518_s5 + $0x8] sm:$0xf] }
  0x9f   : > { %v590_v19 = vadd.f32 1e-06, %v588_v17 }
  0xa0   : > { %v586_v20 = vpop.xlane.xlu0 %585  ;;  %v615_v24 = vadd.f32 1e-06, %v613_v18 }
  0xa1   : > { %v612_v21 = vpop.xlane.xlu1 %611  ;;  %2004 = vrsqrt.f32 %v590_v19  ;;  %v589_v22 = vmul.f32 0.03125, %v586_v20 }
  0xa2   : > { %v614_v23 = vmul.f32 0.03125, %v612_v21 }
  0xa3   : > { %v591_v25 = vadd.f32 1e-06, %v589_v22 }
  0xa4   : > { %v616_v26 = vadd.f32 1e-06, %v614_v23 }
  0xa5   : > { %2006 = vrsqrt.f32 %v591_v25 }
  0xa6   : > { %2008 = vrsqrt.f32 %v615_v24 }
  0xa7   : > { %2010 = vrsqrt.f32 %v616_v26 }
  0xae   : > { %v2005_v27 = vpop.eup %2004 }
  0xaf   : > { %v594_v28 = vmul.f32 %v2005_v27, %v2182_v0 }
  0xb1   : > { %v602_v34 = vmul.f32 %v1769_v30, %v594_v28 }
  0xb2   : > { %v2007_v29 = vpop.eup %2006 }
  0xb3   : > { %v2009_v31 = vpop.eup %2008  ;;  %v595_v32 = vmul.f32 %v2007_v29, %v2184_v2 }
  0xb4   : > { %v2011_v33 = vpop.eup %2010  ;;  %v619_v37 = vmul.f32 %v2009_v31, %v574_v1  ;;  %v2345_v31 = vld [vmem:[%s2516_s3 + $0x8] sm:$0xf] }
  0xb5   : > { %v603_v35 = vmul.f32 %v1769_v30, %v595_v32  ;;  %v620_v38 = vmul.f32 %v2011_v33, %v575_v6  ;;  %v2351_v33 = vld [vmem:[%s2516_s3] sm:$0xff] }
  0xb6   : > { %v621_v41 = vmul.f32 %v1769_v30, %v619_v37  ;;  %v2357_v37 = vld [vmem:[%s2515_s2] sm:$0xff] }
  0xb7   : > { %v604_v39 = vpack.c.bf16 %v603_v35, %v602_v34  ;;  %v622_v42 = vmul.f32 %v1769_v30, %v620_v38  ;;  %v824_v38 = vld [vmem:[%s2515_s2 + $0x8] sm:$0xf] }
  0xb9   : > { %1848 = vmatmul.mubr.msk.bf16.vlgmr.msra.gmra.mxu0 %vm579_vm0, %v604_v39  ;;  %v623_v44 = vpack.c.bf16 %v622_v42, %v621_v41 }
  0xba   : > { %1852 = vmatpush3.bf16.msra.mxu0 %v1988_v36  ;;  %1855 = vmatprep.mubr.msk.bf16.mxu0 %vm2069_vm2, %v2068_v13 }
  0xbb   : > { %1853 = vmatprep.subr.bf16.mxu0 %v2068_v13 }
  0xbe   : > { %1854 = vmatpush3.bf16.msra.mxu0 %v1989_v40 }
  0xbf   : > { %1859 = vmatprep.subr.bf16.mxu0 %v2068_v13 }
  0xc1   : > { %1856 = vmatmul.mubr.msk.bf16.vlgmr.msra.gmra.mxu0 %vm579_vm0, %v623_v44 }
  0xc2   : > { %1860 = vmatpush3.bf16.msra.mxu0 %v1990_v43  ;;  %1863 = vmatprep.mubr.msk.bf16.mxu0 %vm2069_vm2, %v2068_v13 }
  0xc3   : > { %1861 = vmatprep.subr.bf16.mxu0 %v2068_v13 }
  0xc6   : > { %1862 = vmatpush3.bf16.msra.mxu0 %v1991_v45 }
  0xc9   : > { %1864 = vmatmul.mubr.msk.bf16.vlgmr.msra.gmra.mxu0 %vm579_vm0, %v623_v44 }
 0x179   : > { %v677_v46 = vpop.f32.mrf.mxu0 }
 0x17a   : > { %v2232_v47 = vmul.f32 0.35355338, %v677_v46 }
 0x17b   : > { %v1849_v48 = vpop.f32.mrf.mxu0 }
 0x17c   : > { %805 = vrot.lane.b32.xlu1 %v2232_v47, %s2070_s26  ;;  %v884_v46 = vmul.f32 %v2357_v37, %v2232_v47 }
 0x17d   : > { %v680_v49 = vpop.f32.mrf.mxu0 }
 0x17e   : > { %v2236_v50 = vmul.f32 0.35355338, %v680_v49 }
 0x17f   : > { %v1850_v51 = vpop.f32.mrf.mxu0 }
 0x180   : > { %807 = vrot.lane.b32.xlu1 %v2236_v50, %s2070_s26  ;;  %v885_v44 = vmul.f32 %v824_v38, %v2236_v50 }
 0x181   : > { %v739_v52 = vpop.f32.mrf.mxu0 }
 0x182   : > { %910 = vrot.lane.b32.xlu0 %v739_v52, %s2070_s26  ;;  %v948_v21 = vmul.f32 %v2311_v14, %v739_v52 }
 0x183   : > { %v1857_v53 = vpop.f32.mrf.mxu0 }
 0x185   : > { %v742_v54 = vpop.f32.mrf.mxu0 }
 0x186   : > { %817 = vrot.lane.b32.xlu0 %v2232_v47, %s2071_s27  ;;  %912 = vrot.lane.b32.xlu1 %v742_v54, %s2070_s26  ;;  %v949_v22 = vmul.f32 %v2316_v15, %v742_v54 }
 0x187   : > { %v1858_v55 = vpop.f32.mrf.mxu0 }
 0x189   : > { %v2243_v56 = vpop.f32.mrf.mxu0 }
 0x18a   : > { %813 = vrot.lane.b32.xlu0 %v2236_v50, %s2072_s28  ;;  %819 = vrot.lane.b32.xlu1 %v2236_v50, %s2071_s27 }
 0x18b   : > { %v1865_v57 = vpop.f32.mrf.mxu0 }
 0x18d   : > { %v2247_v58 = vpop.f32.mrf.mxu0 }
 0x18e   : > { %v1966_v59 = vpack.i.bf16 %v2247_v58, %v2243_v56  ;;  %v2253_v60 = vpack.c.bf16 %v2247_v58, %v2243_v56  ;;  %920 = vrot.lane.b32.xlu0 %v739_v52, %s2073_s29  ;;  %811 = vrot.lane.b32.xlu1 %v2232_v47, %s2072_s28 }
 0x18f   : > { %v1866_v61 = vpop.f32.mrf.mxu0 }
 0x192   : > { %932 = vrot.lane.b32.xlu0 %v739_v52, %s2074_s18  ;;  %922 = vrot.lane.b32.xlu1 %v742_v54, %s2073_s29 }
 0x196   : > { %829 = vrot.lane.b32.xlu0 %v2236_v50, %s2073_s29  ;;  %934 = vrot.lane.b32.xlu1 %v742_v54, %s2074_s18 }
 0x19a   : > { %853 = vrot.lane.b32.xlu0 %v2236_v50, %s2074_s18 }
 0x19e   : > { %827 = vrot.lane.b32.xlu0 %v2232_v47, %s2073_s29 }
 0x1a2   : > { %851 = vrot.lane.b32.xlu0 %v2232_v47, %s2074_s18 }
 0x1ee   : > { %v806_v62 = vpop.permute.xlu1 %805 }
 0x1ef   : > { %831 = vrot.lane.b32.xlu0 %v806_v62, %s2073_s29  ;;  %855 = vrot.lane.b32.xlu1 %v806_v62, %s2074_s18  ;;  %v886_v40 = vmul.f32 %v2357_v37, %v806_v62 }
 0x1f2   : > { %v2270_v63 = vpop.permute.xlu1 %807 }
 0x1f3   : > { %833 = vrot.lane.b32.xlu0 %v2270_v63, %s2073_s29  ;;  %v887_v50 = vmul.f32 %v824_v38, %v2270_v63 }
 0x1f4   : > { %v2274_v1 = vpop.permute.xlu0 %910 }
 0x1f7   : > { %924 = vrot.lane.b32.xlu0 %v2274_v1, %s2073_s29 }
 0x1f8   : > { %v2278_v3 = vpop.permute.xlu0 %817  ;;  %v2280_v4 = vpop.permute.xlu1 %912 }
 0x1f9   : > { %839 = vrot.lane.b32.xlu1 %v2278_v3, %s2073_s29 }
 0x1fb   : > { %936 = vrot.lane.b32.xlu0 %v2274_v1, %s2074_s18 }
 0x1fc   : > { %v2286_v5 = vpop.permute.xlu0 %813  ;;  %v2288_v6 = vpop.permute.xlu1 %819 }
 0x1fd   : > { %863 = vrot.lane.b32.xlu1 %v2278_v3, %s2074_s18 }
 0x1ff   : > { %837 = vrot.lane.b32.xlu0 %v2286_v5, %s2073_s29 }
 0x200   : > { %v921_v7 = vpop.permute.xlu0 %920  ;;  %v2294_v8 = vpop.permute.xlu1 %811 }
 0x201   : > { %857 = vrot.lane.b32.xlu1 %v2270_v63, %s2074_s18  ;;  %v891_v63 = vmul.f32 %v824_v38, %v2288_v6 }
 0x203   : > { %835 = vrot.lane.b32.xlu0 %v2294_v8, %s2073_s29 }
 0x204   : > { %v933_v9 = vpop.permute.xlu0 %932  ;;  %v923_v10 = vpop.permute.xlu1 %922 }
 0x205   : > { %v944_v12 = vsel %vm875_vm3, %v921_v7, %v933_v9  ;;  %841 = vrot.lane.b32.xlu1 %v2288_v6, %s2073_s29 }
 0x206   : > { %v952_v17 = vmul.f32 %v944_v12, %v2303_v11 }
 0x208   : > { %v935_v18 = vpop.permute.xlu1 %934  ;;  %v956_v23 = vadd.f32 %v952_v17, %v948_v21  ;;  %v830_v27 = vpop.permute.xlu0 %829 }
 0x209   : > { %v945_v19 = vsel %vm875_vm3, %v923_v10, %v935_v18  ;;  %865 = vrot.lane.b32.xlu1 %v2288_v6, %s2074_s18 }
 0x20a   : > { %v953_v20 = vmul.f32 %v945_v19, %v2321_v16  ;;  %v890_v19 = vmul.f32 %v2357_v37, %v2278_v3 }
 0x20c   : > { %v957_v24 = vadd.f32 %v953_v20, %v949_v22  ;;  %v854_v28 = vpop.permute.xlu0 %853 }
 0x20d   : > { %926 = vrot.lane.b32.xlu1 %v2280_v4, %s2073_s29  ;;  %v877_v32 = vsel %vm875_vm3, %v830_v27, %v854_v28  ;;  %v1208_v27 = vsel %vm1206_vm5, %v2253_v60, 0  ;;  %s2077_s29 = smov 16  }
 0x20e   : > { %v960_v25 = vpack.c.bf16 %v957_v24, %v956_v23  ;;  %v893_v41 = vmul.f32 %v877_v32, %v2345_v31 }
 0x210   : > { %1927 = vmatprep.subr.msk.bf16.mxu1 %vm1014_vm4, %v960_v25  ;;  %v1022_v26 = vsel %vm1014_vm4, %v960_v25, 0  ;;  %v828_v29 = vpop.permute.xlu0 %827  ;;  %v901_v48 = vadd.f32 %v893_v41, %v885_v44 }
 0x211   : > { %938 = vrot.lane.b32.xlu1 %v2280_v4, %s2074_s18  ;;  %1868 = vmatpush3.bf16.xpose.msra.mxu1 %v1022_v26 }
 0x212   : > { %1929 = vmatprep.subr.msk.bf16.mxu1 %vm1206_vm5, %v2253_v60  ;;  %v951_v60 = vmul.f32 %v2316_v15, %v2280_v4  ;;  %v888_v15 = vmul.f32 %v2357_v37, %v2294_v8 }
 0x214   : > { %v852_v30 = vpop.permute.xlu0 %851 }
 0x215   : > { %861 = vrot.lane.b32.xlu1 %v2286_v5, %s2074_s18  ;;  %v876_v34 = vsel %vm875_vm3, %v828_v29, %v852_v30 }
 0x216   : > { %v892_v43 = vmul.f32 %v876_v34, %v2351_v33 }
 0x218   : > { %v900_v51 = vadd.f32 %v892_v43, %v884_v46 }
 0x219   : > { %859 = vrot.lane.b32.xlu1 %v2294_v8, %s2074_s18 }
 0x261   : > { %v832_v35 = vpop.permute.xlu0 %831  ;;  %v856_v36 = vpop.permute.xlu1 %855 }
 0x262   : > { %v878_v39 = vsel %vm875_vm3, %v832_v35, %v856_v36 }
 0x263   : > { %v894_v42 = vmul.f32 %v878_v39, %v2351_v33  ;;  %v950_v39 = vmul.f32 %v2311_v14, %v2274_v1 }
 0x265   : > { %v902_v45 = vadd.f32 %v894_v42, %v886_v40  ;;  %v834_v57 = vpop.permute.xlu0 %833 }
 0x267   : > { %v975_v49 = vrot.slane %v902_v45, 4 }
 0x269   : > { %v980_v52 = vsel %vm974_vm6, %v901_v48, %v975_v49  ;;  %v925_v9 = vpop.permute.xlu0 %924 }
 0x26a   : > { %v989_v53 = vpack.c.bf16 %v980_v52, %v900_v51 }
 0x26b   : > { %v840_v54 = vpop.permute.xlu1 %839 }
 0x26c   : > { %1869 = vmatprep.mubr.msk.bf16.mxu1 %vm1014_vm4, %v989_v53  ;;  %v994_v53 = vlaneseq }
 0x26d   : > { %v937_v24 = vpop.permute.xlu0 %936 }
 0x26e   : > { %v946_v29 = vsel %vm875_vm3, %v925_v9, %v937_v24 }
 0x26f   : > { %v864_v55 = vpop.permute.xlu1 %863  ;;  %v954_v6 = vmul.f32 %v946_v29, %v2303_v11  ;;  %v889_v11 = vmul.f32 %v824_v38, %v2286_v5 }
 0x270   : > { %v882_v47 = vsel %vm875_vm3, %v840_v54, %v864_v55  ;;  %v995_v54 = vshrl.u32 %v994_v53, 7 }
 0x271   : > { %v898_v17 = vmul.f32 %v882_v47, %v2351_v33  ;;  %v838_v40 = vpop.permute.xlu0 %837  ;;  %v958_v42 = vadd.f32 %v954_v6, %v950_v39 }
 0x272   : > { %v996_v55 = vadd.s32 8, %v995_v54 }
 0x273   : > { %v858_v61 = vpop.permute.xlu1 %857  ;;  %v906_v25 = vadd.f32 %v898_v17, %v890_v19 }
 0x274   : > { %v879_v62 = vsel %vm875_vm3, %v834_v57, %v858_v61  ;;  %v1001_v57 = vand.u32 127, %v994_v53  ;;  %v2075_v61 = vmov -1e+30  }
 0x275   : > { %v895_v7 = vmul.f32 %v879_v62, %v2345_v31  ;;  %v983_v30 = vrot.slane %v906_v25, 4 }
 0x276   : > { %vm1002_vm7 = vcmp.le.s32.totalorder %v1001_v57, %v995_v54  ;;  %vm1003_vm8 = vcmp.le.s32.totalorder %v1001_v57, %v996_v55 }
 0x277   : > { %v903_v10 = vadd.f32 %v895_v7, %v887_v50  ;;  %v842_v12 = vpop.permute.xlu1 %841  ;;  %v1004_v62 = vsel %vm1002_vm7, 0.0, %v2075_v61  ;;  %v1005_v8 = vsel %vm1003_vm8, 0.0, %v2075_v61 }
 0x278   : > { %v1008_v37 = vrot.slane %v1004_v62, 4  ;;  %v1009_v50 = vrot.slane %v1005_v8, 4 }
 0x279   : > { %v976_v18 = vrot.slane %v903_v10, 4 }
 0x27b   : > { %v866_v20 = vpop.permute.xlu1 %865  ;;  %v977_v21 = vsel %vm974_vm6, %v975_v49, %v976_v18  ;;  %v836_v49 = vpop.permute.xlu0 %835  ;;  %v1013_v18 = vsel %vm974_vm6, %v1005_v8, %v1008_v37 }
 0x27c   : > { %v883_v22 = vsel %vm875_vm3, %v842_v12, %v866_v20  ;;  %v990_v23 = vpack.c.bf16 %v977_v21, %v977_v21 }
 0x27d   : > { %v899_v26 = vmul.f32 %v883_v22, %v2345_v31 }
 0x27e   : > { %1870 = vmatmul.mubr.msk.bf16.vlgmr.msra.gmra.mxu1 %vm1014_vm4, %v990_v23 }
 0x27f   : > { %v907_v28 = vadd.f32 %v899_v26, %v891_v63  ;;  %1880 = vmatpush3.bf16.msra.mxu1 %v1208_v27  ;;  %v927_v3 = vpop.permute.xlu1 %926 }
 0x280   : > { %1891 = vmatprep.subr.bf16.mxu1 %v2068_v13 }
 0x281   : > { %v984_v32 = vrot.slane %v907_v28, 4 }
 0x283   : > { %v985_v34 = vsel %vm974_vm6, %v983_v30, %v984_v32  ;;  %v939_v35 = vpop.permute.xlu1 %938 }
 0x284   : > { %v947_v36 = vsel %vm875_vm3, %v927_v3, %v939_v35 }
 0x285   : > { %v955_v41 = vmul.f32 %v947_v36, %v2321_v16 }
 0x287   : > { %v959_v43 = vadd.f32 %v955_v41, %v951_v60  ;;  %v862_v44 = vpop.permute.xlu1 %861 }
 0x288   : > { %v881_v45 = vsel %vm875_vm3, %v838_v40, %v862_v44 }
 0x289   : > { %v961_v46 = vpack.c.bf16 %v959_v43, %v958_v42  ;;  %v897_v48 = vmul.f32 %v881_v45, %v2345_v31  ;;  %v992_v31 = vpack.c.bf16 %v985_v34, %v985_v34 }
 0x28b   : > { %v905_v51 = vadd.f32 %v897_v48, %v889_v11  ;;  %1928 = vmatprep.subr.msk.bf16.mxu0 %vm1014_vm4, %v961_v46  ;;  %v860_v1 = vpop.permute.xlu1 %859  ;;  %v1079_v4 = vsel %vm1014_vm4, %v961_v46, 0 }
 0x28c   : > { %v880_v14 = vsel %vm875_vm3, %v836_v49, %v860_v1  ;;  %1874 = vmatpush3.bf16.xpose.msra.mxu0 %v1079_v4 }
 0x28d   : > { %v988_v16 = vsel %vm974_vm6, %v905_v51, %v983_v30  ;;  %v896_v5 = vmul.f32 %v880_v14, %v2351_v33  ;;  %v1010_v33 = vsel %vm974_vm6, %v1008_v37, %v1009_v50 }
 0x28f   : > { %v904_v38 = vadd.f32 %v896_v5, %v888_v15 }
 0x291   : > { %v991_v52 = vpack.c.bf16 %v988_v16, %v904_v38 }
 0x293   : > { %1875 = vmatprep.mubr.msk.bf16.mxu0 %vm1014_vm4, %v991_v52 }
 0x294   : > { %1876 = vmatmul.mubr.msk.bf16.vlgmr.msra.gmra.mxu0 %vm1014_vm4, %v992_v31 }
 0x33e   : > { %v1871_v7 = vpop.f32.mrf.mxu1 }
 0x33f   : > { %v1067_v47 = vadd.f32 %v1871_v7, %v1010_v33 }
 0x340   : > { %v1058_v9 = vpop.f32.mrf.mxu1 }
 0x341   : > { %v1059_v10 = vadd.f32 %v1058_v9, %v1004_v62  ;;  %v1136_v12 = vsel %vm1129_vm9, %v1067_v47, -inf }
 0x342   : > { %1137 = vmax.xlane.f32.xlu0 %v1136_v12  ;;  %v1872_v17 = vpop.f32.mrf.mxu1 }
 0x343   : > { %v1130_v21 = vsel %vm1129_vm9, %v1059_v10, -inf }
 0x344   : > { %v1061_v19 = vpop.f32.mrf.mxu1 }
 0x345   : > { %v1062_v20 = vadd.f32 %v1061_v19, %v1013_v18 }
 0x346   : > { %1131 = vmax.xlane.f32.xlu0 %v1130_v21 }
 0x347   : > { %v1133_v22 = vsel %vm1129_vm9, %v1062_v20, -inf }
 0x348   : > { %1134 = vmax.xlane.f32.xlu1 %v1133_v22 }
 0x354   : > { %v1877_v23 = vpop.f32.mrf.mxu0 }
 0x355   : > { %v1124_v63 = vadd.f32 %v1877_v23, %v1010_v33 }
 0x356   : > { %v1115_v24 = vpop.f32.mrf.mxu0 }
 0x357   : > { %v1116_v25 = vadd.f32 %v1115_v24, %v1004_v62  ;;  %v1145_v26 = vsel %vm1129_vm9, %v1124_v63, -inf }
 0x358   : > { %1146 = vmax.xlane.f32.xlu1 %v1145_v26  ;;  %v1878_v27 = vpop.f32.mrf.mxu0 }
 0x359   : > { %v1139_v28 = vsel %vm1129_vm9, %v1116_v25, -inf }
 0x35a   : > { %v1118_v3 = vpop.f32.mrf.mxu0  ;;  %1140 = vmax.xlane.f32.xlu0 %v1139_v28 }
 0x35b   : > { %v1119_v29 = vadd.f32 %v1118_v3, %v1013_v18 }
 0x35d   : > { %v1142_v30 = vsel %vm1129_vm9, %v1119_v29, -inf }
 0x35e   : > { %1143 = vmax.xlane.f32.xlu0 %v1142_v30 }
 0x3cb   : > { %v1138_v32 = vpop.xlane.xlu0 %1137 }
 0x3cc   : > { %v1150_v6 = vsub.f32 %v1067_v47, %v1138_v32 }
 0x3ce   : > { %v1158_v34 = vmul.f32 1.442695, %v1150_v6 }
 0x3cf   : > { %v1132_v35 = vpop.xlane.xlu0 %1131 }
 0x3d0   : > { %2012 = vpow2.f32 %v1158_v34  ;;  %v1148_v36 = vsub.f32 %v1059_v10, %v1132_v35 }
 0x3d1   : > { %v1135_v39 = vpop.xlane.xlu1 %1134 }
 0x3d2   : > { %v1154_v60 = vmul.f32 1.442695, %v1148_v36  ;;  %v1149_v40 = vsub.f32 %v1062_v20, %v1135_v39  ;;  %v1992_v36 = vld [vmem:[%s2524_s11 + $0x8] sm:$0xff]  }
 0x3d4   : > { %2014 = vpow2.f32 %v1154_v60  ;;  %v1156_v41 = vmul.f32 1.442695, %v1149_v40  ;;  %v1993_v60 = vld [vmem:[%s2524_s11] sm:$0xff]  }
 0x3d6   : > { %2016 = vpow2.f32 %v1156_v41 }
 0x3dd   : > { %v2013_v42 = vpop.eup %2012 }
 0x3de   : > { %v1172_v43 = vsel %vm1129_vm9, %v2013_v42, 0.0 }
 0x3df   : > { %1173 = vadd.xlane.f32.xlu0 %v1172_v43 }
 0x3e1   : > { %v2015_v44 = vpop.eup %2014  ;;  %v1147_v45 = vpop.xlane.xlu1 %1146 }
 0x3e2   : > { %v1153_v11 = vsub.f32 %v1124_v63, %v1147_v45  ;;  %v1166_v46 = vsel %vm1129_vm9, %v2015_v44, 0.0 }
 0x3e3   : > { %v2017_v48 = vpop.eup %2016  ;;  %1167 = vadd.xlane.f32.xlu0 %v1166_v46  ;;  %v1141_v49 = vpop.xlane.xlu0 %1140 }
 0x3e4   : > { %v1151_v51 = vsub.f32 %v1116_v25, %v1141_v49  ;;  %v1169_v1 = vsel %vm1129_vm9, %v2017_v48, 0.0  ;;  %v1164_v4 = vmul.f32 1.442695, %v1153_v11 }
 0x3e5   : > { %1170 = vadd.xlane.f32.xlu1 %v1169_v1 }
 0x3e6   : > { %v1160_v14 = vmul.f32 1.442695, %v1151_v51 }
 0x3e7   : > { %v1144_v15 = vpop.xlane.xlu0 %1143 }
 0x3e8   : > { %2018 = vpow2.f32 %v1160_v14  ;;  %v1152_v16 = vsub.f32 %v1119_v29, %v1144_v15 }
 0x3e9   : > { %2020 = vpow2.f32 %v1164_v4 }
 0x3ea   : > { %v1162_v5 = vmul.f32 1.442695, %v1152_v16 }
 0x3ec   : > { %2022 = vpow2.f32 %v1162_v5 }
 0x3f5   : > { %v2019_v38 = vpop.eup %2018 }
 0x3f6   : > { %v1175_v52 = vsel %vm1129_vm9, %v2019_v38, 0.0  ;;  %v2021_v31 = vpop.eup %2020 }
 0x3f7   : > { %1176 = vadd.xlane.f32.xlu1 %v1175_v52  ;;  %v1181_v54 = vsel %vm1129_vm9, %v2021_v31, 0.0 }
 0x3f9   : > { %v2023_v53 = vpop.eup %2022 }
 0x3fa   : > { %v1178_v55 = vsel %vm1129_vm9, %v2023_v53, 0.0 }
 0x3fb   : > { %1182 = vadd.xlane.f32.xlu1 %v1181_v54  ;;  %1179 = vadd.xlane.f32.xlu0 %v1178_v55 }
 0x411   : > { %1967 = vrot.lane.b32.xlu0 %v1966_v59, %s2070_s26  ;;  %s2076_s26 = smov 8  }
 0x468   : > { %v1174_v57 = vpop.xlane.xlu0 %1173 }
 0x469   : > { %2024 = vrcp.f32 %v1174_v57 }
 0x46c   : > { %v1168_v61 = vpop.xlane.xlu0 %1167 }
 0x46d   : > { %2026 = vrcp.f32 %v1168_v61 }
 0x46e   : > { %v1171_v62 = vpop.xlane.xlu1 %1170 }
 0x46f   : > { %2028 = vrcp.f32 %v1171_v62 }
 0x476   : > { %v2025_v8 = vpop.eup %2024 }
 0x477   : > { %v1189_v33 = vmul.f32 %v2025_v8, %v2013_v42 }
 0x479   : > { %v1197_v12 = vpack.c.bf16 %v1189_v33, %v1189_v33 }
 0x47a   : > { %v2027_v37 = vpop.eup %2026 }
 0x47b   : > { %v1185_v7 = vmul.f32 %v2027_v37, %v2015_v44 }
 0x47c   : > { %v2029_v50 = vpop.eup %2028 }
 0x47d   : > { %v1187_v47 = vmul.f32 %v2029_v50, %v2017_v48 }
 0x47f   : > { %v1196_v9 = vpack.c.bf16 %v1187_v47, %v1185_v7 }
 0x480   : > { %v1177_v10 = vpop.xlane.xlu1 %1176 }
 0x481   : > { %1881 = vmatprep.mubr.msk.bf16.mxu1 %vm1129_vm9, %v1196_v9  ;;  %2030 = vrcp.f32 %v1177_v10 }
 0x482   : > { %1882 = vmatmul.mubr.msk.bf16.vlgmr.msra.gmra.mxu1 %vm1129_vm9, %v1197_v12  ;;  %v1994_v12 = vld [vmem:[%s2525_s12 + $0x8] sm:$0xff]  }
 0x483   : > { %1895 = vmatprep.mubr.msk.bf16.mxu1 %vm2069_vm2, %v2068_v13  ;;  %1892 = vmatpush3.bf16.msra.mxu1 %v1992_v36 }
 0x484   : > { %v1183_v56 = vpop.xlane.xlu1 %1182  ;;  %v1180_v58 = vpop.xlane.xlu0 %1179  ;;  %1893 = vmatprep.subr.bf16.mxu1 %v2068_v13 }
 0x485   : > { %2032 = vrcp.f32 %v1183_v56 }
 0x486   : > { %2034 = vrcp.f32 %v1180_v58 }
 0x487   : > { %1894 = vmatpush3.bf16.msra.mxu1 %v1993_v60 }
 0x488   : > { %v1968_v59 = vpop.permute.xlu0 %1967  ;;  %1907 = vmatprep.subr.bf16.mxu1 %v2068_v13 }
 0x489   : > { %v1970_v17 = vunpack.i.h.bf16 %v1968_v59  ;;  %v1969_v18 = vunpack.i.l.bf16 %v1968_v59 }
 0x48b   : > { %v971_v19 = vpack.c.bf16 %v1970_v17, %v1969_v18 }
 0x48d   : > { %1930 = vmatprep.subr.msk.bf16.mxu0 %vm1206_vm5, %v971_v19  ;;  %v1265_v20 = vsel %vm1206_vm5, %v971_v19, 0 }
 0x48e   : > { %1886 = vmatpush3.bf16.msra.mxu0 %v1265_v20  ;;  %v2031_v21 = vpop.eup %2030 }
 0x48f   : > { %1899 = vmatprep.subr.bf16.mxu0 %v2068_v13  ;;  %v1191_v24 = vmul.f32 %v2031_v21, %v2019_v38 }
 0x492   : > { %v2033_v22 = vpop.eup %2032 }
 0x493   : > { %v2035_v23 = vpop.eup %2034  ;;  %v1195_v63 = vmul.f32 %v2033_v22, %v2021_v31  ;;  %v1790_v22 = vld [vmem:[%s2520_s7] ss:$0 sm:$0xff] }
 0x494   : > { %v1193_v25 = vmul.f32 %v2035_v23, %v2023_v53 }
 0x495   : > { %v1199_v26 = vpack.c.bf16 %v1195_v63, %v1195_v63 }
 0x496   : > { %v1198_v27 = vpack.c.bf16 %v1193_v25, %v1191_v24 }
 0x498   : > { %1887 = vmatprep.mubr.msk.bf16.mxu0 %vm1129_vm9, %v1198_v27  ;;  %v1997_v27 = vld [vmem:[%s2526_s13 + $0x30] sm:$0xff]  }
 0x499   : > { %1888 = vmatmul.mubr.msk.bf16.vlgmr.msra.gmra.mxu0 %vm1129_vm9, %v1199_v26  ;;  %v1996_v26 = vld [vmem:[%s2526_s13 + $0x38] sm:$0xff]  }
 0x49a   : > { %1903 = vmatprep.mubr.msk.bf16.mxu0 %vm2069_vm2, %v2068_v13  ;;  %1900 = vmatpush3.bf16.msra.mxu0 %v1994_v12 }
 0x49b   : > { %1901 = vmatprep.subr.bf16.mxu0 %v2068_v13 }
 0x542   : > { %v1883_v28 = vpop.f32.mrf.mxu1 }
 0x543   : > { %v1318_v32 = vrot.slane %v1883_v28, 4  ;;  %v1998_v28 = vld [vmem:[%s2526_s13 + $0x28] sm:$0xff]  }
 0x544   : > { %v1244_v3 = vpop.f32.mrf.mxu1 }
 0x546   : > { %v1884_v29 = vpop.f32.mrf.mxu1 }
 0x547   : > { %v2000_v29 = vld [vmem:[%s2526_s13 + $0x18] sm:$0xff]  }
 0x548   : > { %v1247_v30 = vpop.f32.mrf.mxu1 }
 0x549   : > { %v1317_v6 = vrot.slane %v1247_v30, 4 }
 0x54b   : > { %v1319_v34 = vsel %vm974_vm6, %v1317_v6, %v1318_v32  ;;  %v2003_v6 = vld [vmem:[%s2526_s13] sm:$0xff]  }
 0x54c   : > { %v1971_v35 = vpack.i.bf16 %v1318_v32, %v1319_v34  ;;  %v2002_v32 = vld [vmem:[%s2526_s13 + $0x8] sm:$0xff]  }
 0x54e   : > { %1972 = vrot.lane.b32.xlu1 %v1971_v35, %s2076_s26 }
 0x559   : > { %v1889_v39 = vpop.f32.mrf.mxu0 }
 0x55a   : > { %v1336_v43 = vrot.slane %v1889_v39, 4 }
 0x55b   : > { %v1301_v40 = vpop.f32.mrf.mxu0 }
 0x55d   : > { %v1890_v41 = vpop.f32.mrf.mxu0 }
 0x55f   : > { %v1304_v42 = vpop.f32.mrf.mxu0 }
 0x560   : > { %v1976_v44 = vpack.i.bf16 %v1304_v42, %v1301_v40  ;;  %v1335_v45 = vrot.slane %v1304_v42, 4 }
 0x562   : > { %1977 = vrot.lane.b32.xlu1 %v1976_v44, %s2077_s29  ;;  %v1337_v11 = vsel %vm974_vm6, %v1335_v45, %v1336_v43 }
 0x563   : > { %v1981_v46 = vpack.i.bf16 %v1336_v43, %v1337_v11 }
 0x566   : > { %1982 = vrot.lane.b32.xlu1 %v1981_v46, %s2078_s19 }
 0x5c0   : > { %v1973_v48 = vpop.permute.xlu1 %1972 }
 0x5c1   : > { %v1975_v51 = vunpack.i.h.bf16 %v1973_v48  ;;  %v1974_v1 = vunpack.i.l.bf16 %v1973_v48 }
 0x5c3   : > { %v1345_v16 = vsel %vm1014_vm4, %v1247_v30, %v1975_v51  ;;  %v1344_v5 = vsel %vm1014_vm4, %v1244_v3, %v1974_v1  ;;  %v1999_v3 = vld [vmem:[%s2526_s13 + $0x20] sm:$0xff]   ;;  %v2001_v30 = vld [vmem:[%s2526_s13 + $0x10] sm:$0xff]  }
 0x5d4   : > { %v1978_v49 = vpop.permute.xlu1 %1977 }
 0x5d5   : > { %v1980_v4 = vunpack.i.h.bf16 %v1978_v49  ;;  %v1979_v14 = vunpack.i.l.bf16 %v1978_v49 }
 0x5d7   : > { %v1348_v31 = vsel %vm1346_vm10, %v1345_v16, %v1980_v4  ;;  %v1347_v53 = vsel %vm1346_vm10, %v1344_v5, %v1979_v14 }
 0x5d8   : > { %v1983_v15 = vpop.permute.xlu1 %1982 }
 0x5d9   : > { %v1985_v38 = vunpack.i.h.bf16 %v1983_v15  ;;  %v1984_v52 = vunpack.i.l.bf16 %v1983_v15 }
 0x5db   : > { %v1351_v54 = vsel %vm1349_vm11, %v1348_v31, %v1985_v38  ;;  %v1350_v55 = vsel %vm1349_vm11, %v1347_v53, %v1984_v52 }
 0x5dc   : > { %v1352_v57 = vpack.c.bf16 %v1351_v54, %v1350_v55 }
 0x5de   : > { %1896 = vmatmul.mubr.msk.bf16.vlgmr.msra.gmra.mxu1 %vm579_vm0, %v1352_v57 }
 0x5df   : > { %1923 = vmatprep.mubr.msk.bf16.mxu1 %vm2069_vm2, %v2068_v13  ;;  %1908 = vmatpush3.bf16.msra.mxu1 %v1996_v26 }
 0x5e0   : > { %1909 = vmatprep.subr.bf16.mxu1 %v2068_v13 }
 0x5e3   : > { %1910 = vmatpush3.bf16.msra.mxu1 %v1997_v27 }
 0x5e4   : > { %1911 = vmatprep.subr.bf16.mxu1 %v2068_v13 }
 0x5e7   : > { %1912 = vmatpush3.bf16.msra.mxu1 %v1998_v28 }
 0x5e8   : > { %1913 = vmatprep.subr.bf16.mxu1 %v2068_v13 }
 0x5eb   : > { %1914 = vmatpush3.bf16.msra.mxu1 %v1999_v3 }
 0x5ec   : > { %1915 = vmatprep.subr.bf16.mxu1 %v2068_v13 }
 0x5ef   : > { %1916 = vmatpush3.bf16.msra.mxu1 %v2000_v29 }
 0x5f0   : > { %1917 = vmatprep.subr.bf16.mxu1 %v2068_v13 }
 0x5f3   : > { %1918 = vmatpush3.bf16.msra.mxu1 %v2001_v30 }
 0x5f4   : > { %1919 = vmatprep.subr.bf16.mxu1 %v2068_v13 }
 0x5f7   : > { %1920 = vmatpush3.bf16.msra.mxu1 %v2002_v32 }
 0x5f8   : > { %1921 = vmatprep.subr.bf16.mxu1 %v2068_v13 }
 0x5fb   : > { %1922 = vmatpush3.bf16.msra.mxu1 %v2003_v6 }
 0x69e   : > { %v1406_v61 = vpop.f32.mrf.mxu1 }
 0x69f   : > { %v1413_v62 = vadd.f32 %v1406_v61, %v2182_v0  ;;  %v1995_v0 = vld [vmem:[%s2525_s12] sm:$0xff]  }
 0x6a0   : > { %v1897_v8 = vpop.f32.mrf.mxu1  ;;  %1902 = vmatpush3.bf16.msra.mxu0 %v1995_v0 }
 0x6a1   : > { %v1416_v37 = vmul.f32 %v1413_v62, %v1413_v62 }
 0x6a2   : > { %v1409_v50 = vpop.f32.mrf.mxu1 }
 0x6a3   : > { %v1414_v33 = vadd.f32 %v1409_v50, %v2184_v2  ;;  %v1418_v7 = vsel %vm579_vm0, %v1416_v37, 0.0 }
 0x6a4   : > { %1419 = vadd.xlane.f32.xlu0 %v1418_v7  ;;  %v1898_v47 = vpop.f32.mrf.mxu1 }
 0x6a5   : > { %v1417_v9 = vmul.f32 %v1414_v33, %v1414_v33 }
 0x6a7   : > { %v1421_v10 = vsel %vm583_vm1, %v1417_v9, 0.0 }
 0x6a8   : > { %1422 = vadd.xlane.f32.xlu1 %v1421_v10 }
 0x72d   : > { %v1420_v2 = vpop.xlane.xlu0 %1419 }
 0x72e   : > { %v1424_v56 = vmul.f32 0.03125, %v1420_v2 }
 0x730   : > { %v1426_v58 = vadd.f32 1e-06, %v1424_v56 }
 0x731   : > { %v1423_v59 = vpop.xlane.xlu1 %1422 }
 0x732   : > { %2036 = vrsqrt.f32 %v1426_v58  ;;  %v1425_v17 = vmul.f32 0.03125, %v1423_v59 }
 0x734   : > { %v1427_v18 = vadd.f32 1e-06, %v1425_v17 }
 0x736   : > { %2038 = vrsqrt.f32 %v1427_v18 }
 0x73f   : > { %v2037_v19 = vpop.eup %2036 }
 0x740   : > { %v1430_v20 = vmul.f32 %v2037_v19, %v1413_v62 }
 0x742   : > { %v1438_v63 = vmul.f32 %v1790_v22, %v1430_v20 }
 0x743   : > { %v2039_v21 = vpop.eup %2038 }
 0x744   : > { %v1431_v23 = vmul.f32 %v2039_v21, %v1414_v33 }
 0x746   : > { %v1439_v24 = vmul.f32 %v1790_v22, %v1431_v23 }
 0x748   : > { %v1440_v25 = vpack.c.bf16 %v1439_v24, %v1438_v63 }
 0x74a   : > { %1904 = vmatmul.mubr.msk.bf16.vlgmr.msra.gmra.mxu0 %vm579_vm0, %v1440_v25 }
 0x80a   : > { %v1494_v34 = vpop.f32.mrf.mxu0 }
 0x80b   : > { %v1501_v35 = vmul.f32 %v1494_v34, %v1494_v34 }
 0x80c   : > { %v1905_v36 = vpop.f32.mrf.mxu0 }
 0x80d   : > { %v1503_v39 = vmul.f32 %v1501_v35, %v1494_v34 }
 0x80e   : > { %v1497_v60 = vpop.f32.mrf.mxu0 }
 0x80f   : > { %v1505_v40 = vmul.f32 0.044715, %v1503_v39  ;;  %v1502_v41 = vmul.f32 %v1497_v60, %v1497_v60 }
 0x810   : > { %v1906_v42 = vpop.f32.mrf.mxu0 }
 0x811   : > { %v1507_v43 = vadd.f32 %v1505_v40, %v1494_v34  ;;  %v1504_v44 = vmul.f32 %v1502_v41, %v1497_v60 }
 0x813   : > { %v1509_v45 = vmul.f32 0.7978846, %v1507_v43  ;;  %v1506_v11 = vmul.f32 0.044715, %v1504_v44 }
 0x815   : > { %2040 = vtanh.f32 %v1509_v45  ;;  %v1508_v13 = vadd.f32 %v1506_v11, %v1497_v60 }
 0x817   : > { %v1510_v46 = vmul.f32 0.7978846, %v1508_v13 }
 0x819   : > { %2042 = vtanh.f32 %v1510_v46 }
 0x822   : > { %v2041_v48 = vpop.eup %2040 }
 0x823   : > { %v1513_v49 = vadd.f32 1.0, %v2041_v48 }
 0x825   : > { %v1515_v1 = vmul.f32 0.5, %v1513_v49 }
 0x826   : > { %v2043_v51 = vpop.eup %2042 }
 0x827   : > { %v1514_v4 = vadd.f32 1.0, %v2043_v51  ;;  %v1517_v15 = vmul.f32 %v1515_v1, %v1494_v34 }
 0x829   : > { %v1516_v14 = vmul.f32 0.5, %v1514_v4 }
 0x82b   : > { %v1518_v16 = vmul.f32 %v1516_v14, %v1497_v60 }
 0x82d   : > { %v1519_v5 = vpack.c.bf16 %v1518_v16, %v1517_v15 }
 0x82f   : > { %1924 = vmatmul.mubr.bf16.vlgmr.msra.gmra.mxu1 %v1519_v5 }
 0x8ef   : > { %v1618_v38 = vpop.f32.mrf.mxu1 }
 0x8f0   : > { %1625 = vst.msk [vmem:[%s569_s20] sm:$0xff] %vm579_vm0, %v1618_v38 }
 0x8f1   : > { %v1925_v52 = vpop.f32.mrf.mxu1 }
 0x8f3   : > { %v1621_v31 = vpop.f32.mrf.mxu1 }
 0x8f4   : > { %1626 = vst.msk [vmem:[%s569_s20 + $0x8] sm:$0xf] %vm583_vm1, %v1621_v31 }
 0x8f5   : > { %v1926_v53 = vpop.f32.mrf.mxu1 }
 0x8f6 PF: > { %s24_s15 = sadd.s32 1, %s2066_s15   ;;  %s2528_s29 = smov %s2062_s30 }
 0x8f7   : > { %p21_p5 = scmp.ge.s32.totalorder %s24_s15, 4   ;;  %s2529_s30 = smov %s2531_s16 }
 0x8f9   :  { %23 = sbr.rel (!%p21_p5) target bundleno = 2 (0x2), region = 115 }

// kernel: tpu_custom_call.1
= control target key start
LH: loop header
LB: loop body
LE: loop exit
PB: predicated region body
PF: predicated region fallthrough
CT: control target
= control target key end

     0   :  { %s2154_s29 = smov 0   ;;  %s2156_s30 = smov 0   ;;  %s2513_s0 = inlined_call_operand.vmem [shape: f32[2,12,32], index: 0, kind: input, shape index: {}]   ;;  %s2514_s1 = inlined_call_operand.vmem [shape: f32[2,12,32], index: 1, kind: input, shape index: {}]   ;;  %s2515_s2 = inlined_call_operand.vmem [shape: f32[1,12,8], index: 2, kind: input, shape index: {}]   ;;  %s2516_s3 = inlined_call_operand.vmem [shape: f32[1,12,8], index: 3, kind: input, shape index: {}]   ;;  %s2517_s4 = inlined_call_operand.vmem [shape: f32[1,12,8], index: 4, kind: input, shape index: {}]   ;;  %s2518_s5 = inlined_call_operand.vmem [shape: f32[1,12,8], index: 5, kind: input, shape index: {}]   ;;  %s2519_s6 = inlined_call_operand.vmem [shape: f32[1,32], index: 6, kind: input, shape index: {}]   ;;  %s2520_s7 = inlined_call_operand.vmem [shape: f32[1,32], index: 7, kind: input, shape index: {}]   ;;  %s2521_s8 = inlined_call_operand.vmem [shape: bf16[32,32], index: 8, kind: input, shape index: {}]   ;;  %s2522_s9 = inlined_call_operand.vmem [shape: bf16[32,16], index: 9, kind: input, shape index: {}]   ;;  %s2523_s10 = inlined_call_operand.vmem [shape: bf16[32,16], index: 10, kind: input, shape index: {}]   ;;  %s2524_s11 = inlined_call_operand.vmem [shape: bf16[32,32], index: 11, kind: input, shape index: {}]   ;;  %s2525_s12 = inlined_call_operand.vmem [shape: bf16[32,128], index: 12, kind: input, shape index: {}]   ;;  %s2526_s13 = inlined_call_operand.vmem [shape: bf16[128,32], index: 13, kind: input, shape index: {}]   ;;  %s2527_s14 = inlined_call_operand.vmem [shape: f32[2,12,32], index: 14, kind: output, shape index: {}]  }
   0x1   :  { %s2158_s15 = smov 0  }
   0x2 LB: > { %s36_s16 = sadd.s32 1, %s2062_s30  ;;  %p1762_p0 = scmp.ge.s32.totalorder %s2066_s15, 1  ;;  %s2066_s15 = sphi %s2158_s15, %s24_s15   ;;  %s2062_s30 = sphi %s2156_s30, %s2529_s30   ;;  %s2058_s29 = sphi %s2154_s29, %s2528_s29  }
   0x3   : > { %p38_p1 = scmp.ge.s32.totalorder %s36_s16, 2  ;;  %p465_p2 = scmp.lt.s32.totalorder %s2066_s15, 3 }
   0x5   : > { %s2531_s16 = smov (%p38_p1, %s36_s16), 0  ;;  %p466_p3 = pnand %p1762_p0, %p465_p2 }
   0x6   : > { %p535_p4 = scmp.lt.s32.totalorder (!%p466_p3), %s2058_s29, 1  ;;  %s2070_s26 = smov (!%p466_p3), 120  }
   0x7   : > { %469 = sbr.rel (%p466_p3) target bundleno = 2294 (0x8f6), region = 76  ;;  %s2071_s27 = smov (!%p466_p3), 104  }
   0x8   : > { %s2072_s28 = smov (!%p466_p3), 112   ;;  %s2074_s18 = smov (!%p466_p3), 4  }
   0x9   : > { %s2078_s19 = smov (!%p466_p3), 24  }
   0xc   : > { %s2533_s29 = smov (!%p535_p4, %s2058_s29), 1  ;;  %vm579_vm0 = vcmask 261120   ;;  %vm583_vm1 = vcmask 257024   ;;  %v1986_v12 = vld [vmem:[%s2521_s8 + $0x8] sm:$0xff]   ;;  %v2068_v13 = vmov 0.0   ;;  %v1987_v14 = vld [vmem:[%s2521_s8] sm:$0xff]  }
   0xd   : > { %s2172_s17 = sshll.u32 %s2533_s29, 4  ;;  %1843 = vmatprep.subr.bf16.mxu0 %v2068_v13  ;;  %vm2069_vm2 = vmmov 0   ;;  %v1769_v30 = vld [vmem:[%s2519_s6] ss:$0 sm:$0xff]  ;;  %v1988_v36 = vld [vmem:[%s2522_s9 + $0x8] sm:$0xff]   ;;  %s2073_s29 = smov 124  }
   0xe   : > { %s542_s20 = scalar_lea.vmem %s2513_s0, %s2172_s17  ;;  %s548_s23 = scalar_lea.vmem %s2514_s1, %s2172_s17  ;;  %1844 = vmatpush3.bf16.msra.mxu0 %v1986_v12  ;;  %1847 = vmatprep.mubr.msk.bf16.mxu0 %vm2069_vm2, %v2068_v13  ;;  %v1989_v40 = vld [vmem:[%s2522_s9] sm:$0xff]   ;;  %v1990_v43 = vld [vmem:[%s2523_s10 + $0x8] sm:$0xff]   ;;  %vm875_vm3 = vcmask 31744   ;;  %vm1014_vm4 = vcmask 64512   ;;  %vm1206_vm5 = vcmask 1045504   ;;  %vm974_vm6 = vcmask 1043456  }
   0xf   : > { %v2182_v0 = vld [vmem:[%s542_s20] sm:$0xff]  ;;  %v2184_v2 = vld [vmem:[%s542_s20 + $0x8] sm:$0xf]  ;;  %1845 = vmatprep.subr.bf16.mxu0 %v2068_v13  ;;  %vm1129_vm9 = vcmask 97280   ;;  %vm1346_vm10 = vcmask 130048   ;;  %vm1349_vm11 = vcmask 195584   ;;  %s569_s20 = scalar_lea.vmem %s2527_s14, %s2172_s17 }
  0x10   : > { %v574_v1 = vld [vmem:[%s548_s23] sm:$0xff]  ;;  %v577_v3 = vmul.f32 %v2182_v0, %v2182_v0  ;;  %v578_v5 = vmul.f32 %v2184_v2, %v2184_v2  ;;  %v575_v6 = vld [vmem:[%s548_s23 + $0x8] sm:$0xf] }
  0x11   : > { %v605_v4 = vmul.f32 %v574_v1, %v574_v1  ;;  %v606_v7 = vmul.f32 %v575_v6, %v575_v6  ;;  %v1991_v45 = vld [vmem:[%s2523_s10] sm:$0xff]  }
  0x12   : > { %v580_v8 = vsel %vm579_vm0, %v577_v3, 0.0  ;;  %v584_v10 = vsel %vm583_vm1, %v578_v5, 0.0  ;;  %1846 = vmatpush3.bf16.msra.mxu0 %v1987_v14  ;;  %v2311_v14 = vld [vmem:[%s2517_s4] sm:$0xff] }
  0x13   : > { %v607_v9 = vsel %vm579_vm0, %v605_v4, 0.0  ;;  %581 = vadd.xlane.f32.xlu0 %v580_v8  ;;  %v610_v11 = vsel %vm583_vm1, %v606_v7, 0.0  ;;  %1851 = vmatprep.subr.bf16.mxu0 %v2068_v13 }
  0x14   : > { %608 = vadd.xlane.f32.xlu1 %v607_v9 }
  0x17   : > { %585 = vadd.xlane.f32.xlu0 %v584_v10 }
  0x18   : > { %611 = vadd.xlane.f32.xlu1 %v610_v11  ;;  %v2303_v11 = vld [vmem:[%s2518_s5] sm:$0xff] }
  0x9c   : > { %v582_v15 = vpop.xlane.xlu0 %581 }
  0x9d   : > { %v609_v16 = vpop.xlane.xlu1 %608  ;;  %v588_v17 = vmul.f32 0.03125, %v582_v15  ;;  %v2316_v15 = vld [vmem:[%s2517_s4 + $0x8] sm:$0xf] }
  0x9e   : > { %v613_v18 = vmul.f32 0.03125, %v609_v16  ;;  %v2321_v16 = vld [vmem:[%s2518_s5 + $0x8] sm:$0xf] }
  0x9f   : > { %v590_v19 = vadd.f32 1e-06, %v588_v17 }
  0xa0   : > { %v586_v20 = vpop.xlane.xlu0 %585  ;;  %v615_v24 = vadd.f32 1e-06, %v613_v18 }
  0xa1   : > { %v612_v21 = vpop.xlane.xlu1 %611  ;;  %2004 = vrsqrt.f32 %v590_v19  ;;  %v589_v22 = vmul.f32 0.03125, %v586_v20 }
  0xa2   : > { %v614_v23 = vmul.f32 0.03125, %v612_v21 }
  0xa3   : > { %v591_v25 = vadd.f32 1e-06, %v589_v22 }
  0xa4   : > { %v616_v26 = vadd.f32 1e-06, %v614_v23 }
  0xa5   : > { %2006 = vrsqrt.f32 %v591_v25 }
  0xa6   : > { %2008 = vrsqrt.f32 %v615_v24 }
  0xa7   : > { %2010 = vrsqrt.f32 %v616_v26 }
  0xae   : > { %v2005_v27 = vpop.eup %2004 }
  0xaf   : > { %v594_v28 = vmul.f32 %v2005_v27, %v2182_v0 }
  0xb1   : > { %v602_v34 = vmul.f32 %v1769_v30, %v594_v28 }
  0xb2   : > { %v2007_v29 = vpop.eup %2006 }
  0xb3   : > { %v2009_v31 = vpop.eup %2008  ;;  %v595_v32 = vmul.f32 %v2007_v29, %v2184_v2 }
  0xb4   : > { %v2011_v33 = vpop.eup %2010  ;;  %v619_v37 = vmul.f32 %v2009_v31, %v574_v1  ;;  %v2345_v31 = vld [vmem:[%s2516_s3 + $0x8] sm:$0xf] }
  0xb5   : > { %v603_v35 = vmul.f32 %v1769_v30, %v595_v32  ;;  %v620_v38 = vmul.f32 %v2011_v33, %v575_v6  ;;  %v2351_v33 = vld [vmem:[%s2516_s3] sm:$0xff] }
  0xb6   : > { %v621_v41 = vmul.f32 %v1769_v30, %v619_v37  ;;  %v2357_v37 = vld [vmem:[%s2515_s2] sm:$0xff] }
  0xb7   : > { %v604_v39 = vpack.c.bf16 %v603_v35, %v602_v34  ;;  %v622_v42 = vmul.f32 %v1769_v30, %v620_v38  ;;  %v824_v38 = vld [vmem:[%s2515_s2 + $0x8] sm:$0xf] }
  0xb9   : > { %1848 = vmatmul.mubr.msk.bf16.vlgmr.msra.gmra.mxu0 %vm579_vm0, %v604_v39  ;;  %v623_v44 = vpack.c.bf16 %v622_v42, %v621_v41 }
  0xba   : > { %1852 = vmatpush3.bf16.msra.mxu0 %v1988_v36  ;;  %1855 = vmatprep.mubr.msk.bf16.mxu0 %vm2069_vm2, %v2068_v13 }
  0xbb   : > { %1853 = vmatprep.subr.bf16.mxu0 %v2068_v13 }
  0xbe   : > { %1854 = vmatpush3.bf16.msra.mxu0 %v1989_v40 }
  0xbf   : > { %1859 = vmatprep.subr.bf16.mxu0 %v2068_v13 }
  0xc1   : > { %1856 = vmatmul.mubr.msk.bf16.vlgmr.msra.gmra.mxu0 %vm579_vm0, %v623_v44 }
  0xc2   : > { %1860 = vmatpush3.bf16.msra.mxu0 %v1990_v43  ;;  %1863 = vmatprep.mubr.msk.bf16.mxu0 %vm2069_vm2, %v2068_v13 }
  0xc3   : > { %1861 = vmatprep.subr.bf16.mxu0 %v2068_v13 }
  0xc6   : > { %1862 = vmatpush3.bf16.msra.mxu0 %v1991_v45 }
  0xc9   : > { %1864 = vmatmul.mubr.msk.bf16.vlgmr.msra.gmra.mxu0 %vm579_vm0, %v623_v44 }
 0x179   : > { %v677_v46 = vpop.f32.mrf.mxu0 }
 0x17a   : > { %v2232_v47 = vmul.f32 0.35355338, %v677_v46 }
 0x17b   : > { %v1849_v48 = vpop.f32.mrf.mxu0 }
 0x17c   : > { %805 = vrot.lane.b32.xlu1 %v2232_v47, %s2070_s26  ;;  %v884_v46 = vmul.f32 %v2357_v37, %v2232_v47 }
 0x17d   : > { %v680_v49 = vpop.f32.mrf.mxu0 }
 0x17e   : > { %v2236_v50 = vmul.f32 0.35355338, %v680_v49 }
 0x17f   : > { %v1850_v51 = vpop.f32.mrf.mxu0 }
 0x180   : > { %807 = vrot.lane.b32.xlu1 %v2236_v50, %s2070_s26  ;;  %v885_v44 = vmul.f32 %v824_v38, %v2236_v50 }
 0x181   : > { %v739_v52 = vpop.f32.mrf.mxu0 }
 0x182   : > { %910 = vrot.lane.b32.xlu0 %v739_v52, %s2070_s26  ;;  %v948_v21 = vmul.f32 %v2311_v14, %v739_v52 }
 0x183   : > { %v1857_v53 = vpop.f32.mrf.mxu0 }
 0x185   : > { %v742_v54 = vpop.f32.mrf.mxu0 }
 0x186   : > { %817 = vrot.lane.b32.xlu0 %v2232_v47, %s2071_s27  ;;  %912 = vrot.lane.b32.xlu1 %v742_v54, %s2070_s26  ;;  %v949_v22 = vmul.f32 %v2316_v15, %v742_v54 }
 0x187   : > { %v1858_v55 = vpop.f32.mrf.mxu0 }
 0x189   : > { %v2243_v56 = vpop.f32.mrf.mxu0 }
 0x18a   : > { %813 = vrot.lane.b32.xlu0 %v2236_v50, %s2072_s28  ;;  %819 = vrot.lane.b32.xlu1 %v2236_v50, %s2071_s27 }
 0x18b   : > { %v1865_v57 = vpop.f32.mrf.mxu0 }
 0x18d   : > { %v2247_v58 = vpop.f32.mrf.mxu0 }
 0x18e   : > { %v1966_v59 = vpack.i.bf16 %v2247_v58, %v2243_v56  ;;  %v2253_v60 = vpack.c.bf16 %v2247_v58, %v2243_v56  ;;  %920 = vrot.lane.b32.xlu0 %v739_v52, %s2073_s29  ;;  %811 = vrot.lane.b32.xlu1 %v2232_v47, %s2072_s28 }
 0x18f   : > { %v1866_v61 = vpop.f32.mrf.mxu0 }
 0x192   : > { %932 = vrot.lane.b32.xlu0 %v739_v52, %s2074_s18  ;;  %922 = vrot.lane.b32.xlu1 %v742_v54, %s2073_s29 }
 0x196   : > { %829 = vrot.lane.b32.xlu0 %v2236_v50, %s2073_s29  ;;  %934 = vrot.lane.b32.xlu1 %v742_v54, %s2074_s18 }
 0x19a   : > { %853 = vrot.lane.b32.xlu0 %v2236_v50, %s2074_s18 }
 0x19e   : > { %827 = vrot.lane.b32.xlu0 %v2232_v47, %s2073_s29 }
 0x1a2   : > { %851 = vrot.lane.b32.xlu0 %v2232_v47, %s2074_s18 }
 0x1ee   : > { %v806_v62 = vpop.permute.xlu1 %805 }
 0x1ef   : > { %831 = vrot.lane.b32.xlu0 %v806_v62, %s2073_s29  ;;  %855 = vrot.lane.b32.xlu1 %v806_v62, %s2074_s18  ;;  %v886_v40 = vmul.f32 %v2357_v37, %v806_v62 }
 0x1f2   : > { %v2270_v63 = vpop.permute.xlu1 %807 }
 0x1f3   : > { %833 = vrot.lane.b32.xlu0 %v2270_v63, %s2073_s29  ;;  %v887_v50 = vmul.f32 %v824_v38, %v2270_v63 }
 0x1f4   : > { %v2274_v1 = vpop.permute.xlu0 %910 }
 0x1f7   : > { %924 = vrot.lane.b32.xlu0 %v2274_v1, %s2073_s29 }
 0x1f8   : > { %v2278_v3 = vpop.permute.xlu0 %817  ;;  %v2280_v4 = vpop.permute.xlu1 %912 }
 0x1f9   : > { %839 = vrot.lane.b32.xlu1 %v2278_v3, %s2073_s29 }
 0x1fb   : > { %936 = vrot.lane.b32.xlu0 %v2274_v1, %s2074_s18 }
 0x1fc   : > { %v2286_v5 = vpop.permute.xlu0 %813  ;;  %v2288_v6 = vpop.permute.xlu1 %819 }
 0x1fd   : > { %863 = vrot.lane.b32.xlu1 %v2278_v3, %s2074_s18 }
 0x1ff   : > { %837 = vrot.lane.b32.xlu0 %v2286_v5, %s2073_s29 }
 0x200   : > { %v921_v7 = vpop.permute.xlu0 %920  ;;  %v2294_v8 = vpop.permute.xlu1 %811 }
 0x201   : > { %857 = vrot.lane.b32.xlu1 %v2270_v63, %s2074_s18  ;;  %v891_v63 = vmul.f32 %v824_v38, %v2288_v6 }
 0x203   : > { %835 = vrot.lane.b32.xlu0 %v2294_v8, %s2073_s29 }
 0x204   : > { %v933_v9 = vpop.permute.xlu0 %932  ;;  %v923_v10 = vpop.permute.xlu1 %922 }
 0x205   : > { %v944_v12 = vsel %vm875_vm3, %v921_v7, %v933_v9  ;;  %841 = vrot.lane.b32.xlu1 %v2288_v6, %s2073_s29 }
 0x206   : > { %v952_v17 = vmul.f32 %v944_v12, %v2303_v11 }
 0x208   : > { %v935_v18 = vpop.permute.xlu1 %934  ;;  %v956_v23 = vadd.f32 %v952_v17, %v948_v21  ;;  %v830_v27 = vpop.permute.xlu0 %829 }
 0x209   : > { %v945_v19 = vsel %vm875_vm3, %v923_v10, %v935_v18  ;;  %865 = vrot.lane.b32.xlu1 %v2288_v6, %s2074_s18 }
 0x20a   : > { %v953_v20 = vmul.f32 %v945_v19, %v2321_v16  ;;  %v890_v19 = vmul.f32 %v2357_v37, %v2278_v3 }
 0x20c   : > { %v957_v24 = vadd.f32 %v953_v20, %v949_v22  ;;  %v854_v28 = vpop.permute.xlu0 %853 }
 0x20d   : > { %926 = vrot.lane.b32.xlu1 %v2280_v4, %s2073_s29  ;;  %v877_v32 = vsel %vm875_vm3, %v830_v27, %v854_v28  ;;  %v1208_v27 = vsel %vm1206_vm5, %v2253_v60, 0  ;;  %s2077_s29 = smov 16  }
 0x20e   : > { %v960_v25 = vpack.c.bf16 %v957_v24, %v956_v23  ;;  %v893_v41 = vmul.f32 %v877_v32, %v2345_v31 }
 0x210   : > { %1927 = vmatprep.subr.msk.bf16.mxu1 %vm1014_vm4, %v960_v25  ;;  %v1022_v26 = vsel %vm1014_vm4, %v960_v25, 0  ;;  %v828_v29 = vpop.permute.xlu0 %827  ;;  %v901_v48 = vadd.f32 %v893_v41, %v885_v44 }
 0x211   : > { %938 = vrot.lane.b32.xlu1 %v2280_v4, %s2074_s18  ;;  %1868 = vmatpush3.bf16.xpose.msra.mxu1 %v1022_v26 }
 0x212   : > { %1929 = vmatprep.subr.msk.bf16.mxu1 %vm1206_vm5, %v2253_v60  ;;  %v951_v60 = vmul.f32 %v2316_v15, %v2280_v4  ;;  %v888_v15 = vmul.f32 %v2357_v37, %v2294_v8 }
 0x214   : > { %v852_v30 = vpop.permute.xlu0 %851 }
 0x215   : > { %861 = vrot.lane.b32.xlu1 %v2286_v5, %s2074_s18  ;;  %v876_v34 = vsel %vm875_vm3, %v828_v29, %v852_v30 }
 0x216   : > { %v892_v43 = vmul.f32 %v876_v34, %v2351_v33 }
 0x218   : > { %v900_v51 = vadd.f32 %v892_v43, %v884_v46 }
 0x219   : > { %859 = vrot.lane.b32.xlu1 %v2294_v8, %s2074_s18 }
 0x261   : > { %v832_v35 = vpop.permute.xlu0 %831  ;;  %v856_v36 = vpop.permute.xlu1 %855 }
 0x262   : > { %v878_v39 = vsel %vm875_vm3, %v832_v35, %v856_v36 }
 0x263   : > { %v894_v42 = vmul.f32 %v878_v39, %v2351_v33  ;;  %v950_v39 = vmul.f32 %v2311_v14, %v2274_v1 }
 0x265   : > { %v902_v45 = vadd.f32 %v894_v42, %v886_v40  ;;  %v834_v57 = vpop.permute.xlu0 %833 }
 0x267   : > { %v975_v49 = vrot.slane %v902_v45, 4 }
 0x269   : > { %v980_v52 = vsel %vm974_vm6, %v901_v48, %v975_v49  ;;  %v925_v9 = vpop.permute.xlu0 %924 }
 0x26a   : > { %v989_v53 = vpack.c.bf16 %v980_v52, %v900_v51 }
 0x26b   : > { %v840_v54 = vpop.permute.xlu1 %839 }
 0x26c   : > { %1869 = vmatprep.mubr.msk.bf16.mxu1 %vm1014_vm4, %v989_v53  ;;  %v994_v53 = vlaneseq }
 0x26d   : > { %v937_v24 = vpop.permute.xlu0 %936 }
 0x26e   : > { %v946_v29 = vsel %vm875_vm3, %v925_v9, %v937_v24 }
 0x26f   : > { %v864_v55 = vpop.permute.xlu1 %863  ;;  %v954_v6 = vmul.f32 %v946_v29, %v2303_v11  ;;  %v889_v11 = vmul.f32 %v824_v38, %v2286_v5 }
 0x270   : > { %v882_v47 = vsel %vm875_vm3, %v840_v54, %v864_v55  ;;  %v995_v54 = vshrl.u32 %v994_v53, 7 }
 0x271   : > { %v898_v17 = vmul.f32 %v882_v47, %v2351_v33  ;;  %v838_v40 = vpop.permute.xlu0 %837  ;;  %v958_v42 = vadd.f32 %v954_v6, %v950_v39 }
 0x272   : > { %v996_v55 = vadd.s32 8, %v995_v54 }
 0x273   : > { %v858_v61 = vpop.permute.xlu1 %857  ;;  %v906_v25 = vadd.f32 %v898_v17, %v890_v19 }
 0x274   : > { %v879_v62 = vsel %vm875_vm3, %v834_v57, %v858_v61  ;;  %v1001_v57 = vand.u32 127, %v994_v53  ;;  %v2075_v61 = vmov -1e+30  }
 0x275   : > { %v895_v7 = vmul.f32 %v879_v62, %v2345_v31  ;;  %v983_v30 = vrot.slane %v906_v25, 4 }
 0x276   : > { %vm1002_vm7 = vcmp.le.s32.totalorder %v1001_v57, %v995_v54  ;;  %vm1003_vm8 = vcmp.le.s32.totalorder %v1001_v57, %v996_v55 }
 0x277   : > { %v903_v10 = vadd.f32 %v895_v7, %v887_v50  ;;  %v842_v12 = vpop.permute.xlu1 %841  ;;  %v1004_v62 = vsel %vm1002_vm7, 0.0, %v2075_v61  ;;  %v1005_v8 = vsel %vm1003_vm8, 0.0, %v2075_v61 }
 0x278   : > { %v1008_v37 = vrot.slane %v1004_v62, 4  ;;  %v1009_v50 = vrot.slane %v1005_v8, 4 }
 0x279   : > { %v976_v18 = vrot.slane %v903_v10, 4 }
 0x27b   : > { %v866_v20 = vpop.permute.xlu1 %865  ;;  %v977_v21 = vsel %vm974_vm6, %v975_v49, %v976_v18  ;;  %v836_v49 = vpop.permute.xlu0 %835  ;;  %v1013_v18 = vsel %vm974_vm6, %v1005_v8, %v1008_v37 }
 0x27c   : > { %v883_v22 = vsel %vm875_vm3, %v842_v12, %v866_v20  ;;  %v990_v23 = vpack.c.bf16 %v977_v21, %v977_v21 }
 0x27d   : > { %v899_v26 = vmul.f32 %v883_v22, %v2345_v31 }
 0x27e   : > { %1870 = vmatmul.mubr.msk.bf16.vlgmr.msra.gmra.mxu1 %vm1014_vm4, %v990_v23 }
 0x27f   : > { %v907_v28 = vadd.f32 %v899_v26, %v891_v63  ;;  %1880 = vmatpush3.bf16.msra.mxu1 %v1208_v27  ;;  %v927_v3 = vpop.permute.xlu1 %926 }
 0x280   : > { %1891 = vmatprep.subr.bf16.mxu1 %v2068_v13 }
 0x281   : > { %v984_v32 = vrot.slane %v907_v28, 4 }
 0x283   : > { %v985_v34 = vsel %vm974_vm6, %v983_v30, %v984_v32  ;;  %v939_v35 = vpop.permute.xlu1 %938 }
 0x284   : > { %v947_v36 = vsel %vm875_vm3, %v927_v3, %v939_v35 }
 0x285   : > { %v955_v41 = vmul.f32 %v947_v36, %v2321_v16 }
 0x287   : > { %v959_v43 = vadd.f32 %v955_v41, %v951_v60  ;;  %v862_v44 = vpop.permute.xlu1 %861 }
 0x288   : > { %v881_v45 = vsel %vm875_vm3, %v838_v40, %v862_v44 }
 0x289   : > { %v961_v46 = vpack.c.bf16 %v959_v43, %v958_v42  ;;  %v897_v48 = vmul.f32 %v881_v45, %v2345_v31  ;;  %v992_v31 = vpack.c.bf16 %v985_v34, %v985_v34 }
 0x28b   : > { %v905_v51 = vadd.f32 %v897_v48, %v889_v11  ;;  %1928 = vmatprep.subr.msk.bf16.mxu0 %vm1014_vm4, %v961_v46  ;;  %v860_v1 = vpop.permute.xlu1 %859  ;;  %v1079_v4 = vsel %vm1014_vm4, %v961_v46, 0 }
 0x28c   : > { %v880_v14 = vsel %vm875_vm3, %v836_v49, %v860_v1  ;;  %1874 = vmatpush3.bf16.xpose.msra.mxu0 %v1079_v4 }
 0x28d   : > { %v988_v16 = vsel %vm974_vm6, %v905_v51, %v983_v30  ;;  %v896_v5 = vmul.f32 %v880_v14, %v2351_v33  ;;  %v1010_v33 = vsel %vm974_vm6, %v1008_v37, %v1009_v50 }
 0x28f   : > { %v904_v38 = vadd.f32 %v896_v5, %v888_v15 }
 0x291   : > { %v991_v52 = vpack.c.bf16 %v988_v16, %v904_v38 }
 0x293   : > { %1875 = vmatprep.mubr.msk.bf16.mxu0 %vm1014_vm4, %v991_v52 }
 0x294   : > { %1876 = vmatmul.mubr.msk.bf16.vlgmr.msra.gmra.mxu0 %vm1014_vm4, %v992_v31 }
 0x33e   : > { %v1871_v7 = vpop.f32.mrf.mxu1 }
 0x33f   : > { %v1067_v47 = vadd.f32 %v1871_v7, %v1010_v33 }
 0x340   : > { %v1058_v9 = vpop.f32.mrf.mxu1 }
 0x341   : > { %v1059_v10 = vadd.f32 %v1058_v9, %v1004_v62  ;;  %v1136_v12 = vsel %vm1129_vm9, %v1067_v47, -inf }
 0x342   : > { %1137 = vmax.xlane.f32.xlu0 %v1136_v12  ;;  %v1872_v17 = vpop.f32.mrf.mxu1 }
 0x343   : > { %v1130_v21 = vsel %vm1129_vm9, %v1059_v10, -inf }
 0x344   : > { %v1061_v19 = vpop.f32.mrf.mxu1 }
 0x345   : > { %v1062_v20 = vadd.f32 %v1061_v19, %v1013_v18 }
 0x346   : > { %1131 = vmax.xlane.f32.xlu0 %v1130_v21 }
 0x347   : > { %v1133_v22 = vsel %vm1129_vm9, %v1062_v20, -inf }
 0x348   : > { %1134 = vmax.xlane.f32.xlu1 %v1133_v22 }
 0x354   : > { %v1877_v23 = vpop.f32.mrf.mxu0 }
 0x355   : > { %v1124_v63 = vadd.f32 %v1877_v23, %v1010_v33 }
 0x356   : > { %v1115_v24 = vpop.f32.mrf.mxu0 }
 0x357   : > { %v1116_v25 = vadd.f32 %v1115_v24, %v1004_v62  ;;  %v1145_v26 = vsel %vm1129_vm9, %v1124_v63, -inf }
 0x358   : > { %1146 = vmax.xlane.f32.xlu1 %v1145_v26  ;;  %v1878_v27 = vpop.f32.mrf.mxu0 }
 0x359   : > { %v1139_v28 = vsel %vm1129_vm9, %v1116_v25, -inf }
 0x35a   : > { %v1118_v3 = vpop.f32.mrf.mxu0  ;;  %1140 = vmax.xlane.f32.xlu0 %v1139_v28 }
 0x35b   : > { %v1119_v29 = vadd.f32 %v1118_v3, %v1013_v18 }
 0x35d   : > { %v1142_v30 = vsel %vm1129_vm9, %v1119_v29, -inf }
 0x35e   : > { %1143 = vmax.xlane.f32.xlu0 %v1142_v30 }
 0x3cb   : > { %v1138_v32 = vpop.xlane.xlu0 %1137 }
 0x3cc   : > { %v1150_v6 = vsub.f32 %v1067_v47, %v1138_v32 }
 0x3ce   : > { %v1158_v34 = vmul.f32 1.442695, %v1150_v6 }
 0x3cf   : > { %v1132_v35 = vpop.xlane.xlu0 %1131 }
 0x3d0   : > { %2012 = vpow2.f32 %v1158_v34  ;;  %v1148_v36 = vsub.f32 %v1059_v10, %v1132_v35 }
 0x3d1   : > { %v1135_v39 = vpop.xlane.xlu1 %1134 }
 0x3d2   : > { %v1154_v60 = vmul.f32 1.442695, %v1148_v36  ;;  %v1149_v40 = vsub.f32 %v1062_v20, %v1135_v39  ;;  %v1992_v36 = vld [vmem:[%s2524_s11 + $0x8] sm:$0xff]  }
 0x3d4   : > { %2014 = vpow2.f32 %v1154_v60  ;;  %v1156_v41 = vmul.f32 1.442695, %v1149_v40  ;;  %v1993_v60 = vld [vmem:[%s2524_s11] sm:$0xff]  }
 0x3d6   : > { %2016 = vpow2.f32 %v1156_v41 }
 0x3dd   : > { %v2013_v42 = vpop.eup %2012 }
 0x3de   : > { %v1172_v43 = vsel %vm1129_vm9, %v2013_v42, 0.0 }
 0x3df   : > { %1173 = vadd.xlane.f32.xlu0 %v1172_v43 }
 0x3e1   : > { %v2015_v44 = vpop.eup %2014  ;;  %v1147_v45 = vpop.xlane.xlu1 %1146 }
 0x3e2   : > { %v1153_v11 = vsub.f32 %v1124_v63, %v1147_v45  ;;  %v1166_v46 = vsel %vm1129_vm9, %v2015_v44, 0.0 }
 0x3e3   : > { %v2017_v48 = vpop.eup %2016  ;;  %1167 = vadd.xlane.f32.xlu0 %v1166_v46  ;;  %v1141_v49 = vpop.xlane.xlu0 %1140 }
 0x3e4   : > { %v1151_v51 = vsub.f32 %v1116_v25, %v1141_v49  ;;  %v1169_v1 = vsel %vm1129_vm9, %v2017_v48, 0.0  ;;  %v1164_v4 = vmul.f32 1.442695, %v1153_v11 }
 0x3e5   : > { %1170 = vadd.xlane.f32.xlu1 %v1169_v1 }
 0x3e6   : > { %v1160_v14 = vmul.f32 1.442695, %v1151_v51 }
 0x3e7   : > { %v1144_v15 = vpop.xlane.xlu0 %1143 }
 0x3e8   : > { %2018 = vpow2.f32 %v1160_v14  ;;  %v1152_v16 = vsub.f32 %v1119_v29, %v1144_v15 }
 0x3e9   : > { %2020 = vpow2.f32 %v1164_v4 }
 0x3ea   : > { %v1162_v5 = vmul.f32 1.442695, %v1152_v16 }
 0x3ec   : > { %2022 = vpow2.f32 %v1162_v5 }
 0x3f5   : > { %v2019_v38 = vpop.eup %2018 }
 0x3f6   : > { %v1175_v52 = vsel %vm1129_vm9, %v2019_v38, 0.0  ;;  %v2021_v31 = vpop.eup %2020 }
 0x3f7   : > { %1176 = vadd.xlane.f32.xlu1 %v1175_v52  ;;  %v1181_v54 = vsel %vm1129_vm9, %v2021_v31, 0.0 }
 0x3f9   : > { %v2023_v53 = vpop.eup %2022 }
 0x3fa   : > { %v1178_v55 = vsel %vm1129_vm9, %v2023_v53, 0.0 }
 0x3fb   : > { %1182 = vadd.xlane.f32.xlu1 %v1181_v54  ;;  %1179 = vadd.xlane.f32.xlu0 %v1178_v55 }
 0x411   : > { %1967 = vrot.lane.b32.xlu0 %v1966_v59, %s2070_s26  ;;  %s2076_s26 = smov 8  }
 0x468   : > { %v1174_v57 = vpop.xlane.xlu0 %1173 }
 0x469   : > { %2024 = vrcp.f32 %v1174_v57 }
 0x46c   : > { %v1168_v61 = vpop.xlane.xlu0 %1167 }
 0x46d   : > { %2026 = vrcp.f32 %v1168_v61 }
 0x46e   : > { %v1171_v62 = vpop.xlane.xlu1 %1170 }
 0x46f   : > { %2028 = vrcp.f32 %v1171_v62 }
 0x476   : > { %v2025_v8 = vpop.eup %2024 }
 0x477   : > { %v1189_v33 = vmul.f32 %v2025_v8, %v2013_v42 }
 0x479   : > { %v1197_v12 = vpack.c.bf16 %v1189_v33, %v1189_v33 }
 0x47a   : > { %v2027_v37 = vpop.eup %2026 }
 0x47b   : > { %v1185_v7 = vmul.f32 %v2027_v37, %v2015_v44 }
 0x47c   : > { %v2029_v50 = vpop.eup %2028 }
 0x47d   : > { %v1187_v47 = vmul.f32 %v2029_v50, %v2017_v48 }
 0x47f   : > { %v1196_v9 = vpack.c.bf16 %v1187_v47, %v1185_v7 }
 0x480   : > { %v1177_v10 = vpop.xlane.xlu1 %1176 }
 0x481   : > { %1881 = vmatprep.mubr.msk.bf16.mxu1 %vm1129_vm9, %v1196_v9  ;;  %2030 = vrcp.f32 %v1177_v10 }
 0x482   : > { %1882 = vmatmul.mubr.msk.bf16.vlgmr.msra.gmra.mxu1 %vm1129_vm9, %v1197_v12  ;;  %v1994_v12 = vld [vmem:[%s2525_s12 + $0x8] sm:$0xff]  }
 0x483   : > { %1895 = vmatprep.mubr.msk.bf16.mxu1 %vm2069_vm2, %v2068_v13  ;;  %1892 = vmatpush3.bf16.msra.mxu1 %v1992_v36 }
 0x484   : > { %v1183_v56 = vpop.xlane.xlu1 %1182  ;;  %v1180_v58 = vpop.xlane.xlu0 %1179  ;;  %1893 = vmatprep.subr.bf16.mxu1 %v2068_v13 }
 0x485   : > { %2032 = vrcp.f32 %v1183_v56 }
 0x486   : > { %2034 = vrcp.f32 %v1180_v58 }
 0x487   : > { %1894 = vmatpush3.bf16.msra.mxu1 %v1993_v60 }
 0x488   : > { %v1968_v59 = vpop.permute.xlu0 %1967  ;;  %1907 = vmatprep.subr.bf16.mxu1 %v2068_v13 }
 0x489   : > { %v1970_v17 = vunpack.i.h.bf16 %v1968_v59  ;;  %v1969_v18 = vunpack.i.l.bf16 %v1968_v59 }
 0x48b   : > { %v971_v19 = vpack.c.bf16 %v1970_v17, %v1969_v18 }
 0x48d   : > { %1930 = vmatprep.subr.msk.bf16.mxu0 %vm1206_vm5, %v971_v19  ;;  %v1265_v20 = vsel %vm1206_vm5, %v971_v19, 0 }
 0x48e   : > { %1886 = vmatpush3.bf16.msra.mxu0 %v1265_v20  ;;  %v2031_v21 = vpop.eup %2030 }
 0x48f   : > { %1899 = vmatprep.subr.bf16.mxu0 %v2068_v13  ;;  %v1191_v24 = vmul.f32 %v2031_v21, %v2019_v38 }
 0x492   : > { %v2033_v22 = vpop.eup %2032 }
 0x493   : > { %v2035_v23 = vpop.eup %2034  ;;  %v1195_v63 = vmul.f32 %v2033_v22, %v2021_v31  ;;  %v1790_v22 = vld [vmem:[%s2520_s7] ss:$0 sm:$0xff] }
 0x494   : > { %v1193_v25 = vmul.f32 %v2035_v23, %v2023_v53 }
 0x495   : > { %v1199_v26 = vpack.c.bf16 %v1195_v63, %v1195_v63 }
 0x496   : > { %v1198_v27 = vpack.c.bf16 %v1193_v25, %v1191_v24 }
 0x498   : > { %1887 = vmatprep.mubr.msk.bf16.mxu0 %vm1129_vm9, %v1198_v27  ;;  %v1997_v27 = vld [vmem:[%s2526_s13 + $0x30] sm:$0xff]  }
 0x499   : > { %1888 = vmatmul.mubr.msk.bf16.vlgmr.msra.gmra.mxu0 %vm1129_vm9, %v1199_v26  ;;  %v1996_v26 = vld [vmem:[%s2526_s13 + $0x38] sm:$0xff]  }
 0x49a   : > { %1903 = vmatprep.mubr.msk.bf16.mxu0 %vm2069_vm2, %v2068_v13  ;;  %1900 = vmatpush3.bf16.msra.mxu0 %v1994_v12 }
 0x49b   : > { %1901 = vmatprep.subr.bf16.mxu0 %v2068_v13 }
 0x542   : > { %v1883_v28 = vpop.f32.mrf.mxu1 }
 0x543   : > { %v1318_v32 = vrot.slane %v1883_v28, 4  ;;  %v1998_v28 = vld [vmem:[%s2526_s13 + $0x28] sm:$0xff]  }
 0x544   : > { %v1244_v3 = vpop.f32.mrf.mxu1 }
 0x546   : > { %v1884_v29 = vpop.f32.mrf.mxu1 }
 0x547   : > { %v2000_v29 = vld [vmem:[%s2526_s13 + $0x18] sm:$0xff]  }
 0x548   : > { %v1247_v30 = vpop.f32.mrf.mxu1 }
 0x549   : > { %v1317_v6 = vrot.slane %v1247_v30, 4 }
 0x54b   : > { %v1319_v34 = vsel %vm974_vm6, %v1317_v6, %v1318_v32  ;;  %v2003_v6 = vld [vmem:[%s2526_s13] sm:$0xff]  }
 0x54c   : > { %v1971_v35 = vpack.i.bf16 %v1318_v32, %v1319_v34  ;;  %v2002_v32 = vld [vmem:[%s2526_s13 + $0x8] sm:$0xff]  }
 0x54e   : > { %1972 = vrot.lane.b32.xlu1 %v1971_v35, %s2076_s26 }
 0x559   : > { %v1889_v39 = vpop.f32.mrf.mxu0 }
 0x55a   : > { %v1336_v43 = vrot.slane %v1889_v39, 4 }
 0x55b   : > { %v1301_v40 = vpop.f32.mrf.mxu0 }
 0x55d   : > { %v1890_v41 = vpop.f32.mrf.mxu0 }
 0x55f   : > { %v1304_v42 = vpop.f32.mrf.mxu0 }
 0x560   : > { %v1976_v44 = vpack.i.bf16 %v1304_v42, %v1301_v40  ;;  %v1335_v45 = vrot.slane %v1304_v42, 4 }
 0x562   : > { %1977 = vrot.lane.b32.xlu1 %v1976_v44, %s2077_s29  ;;  %v1337_v11 = vsel %vm974_vm6, %v1335_v45, %v1336_v43 }
 0x563   : > { %v1981_v46 = vpack.i.bf16 %v1336_v43, %v1337_v11 }
 0x566   : > { %1982 = vrot.lane.b32.xlu1 %v1981_v46, %s2078_s19 }
 0x5c0   : > { %v1973_v48 = vpop.permute.xlu1 %1972 }
 0x5c1   : > { %v1975_v51 = vunpack.i.h.bf16 %v1973_v48  ;;  %v1974_v1 = vunpack.i.l.bf16 %v1973_v48 }
 0x5c3   : > { %v1345_v16 = vsel %vm1014_vm4, %v1247_v30, %v1975_v51  ;;  %v1344_v5 = vsel %vm1014_vm4, %v1244_v3, %v1974_v1  ;;  %v1999_v3 = vld [vmem:[%s2526_s13 + $0x20] sm:$0xff]   ;;  %v2001_v30 = vld [vmem:[%s2526_s13 + $0x10] sm:$0xff]  }
 0x5d4   : > { %v1978_v49 = vpop.permute.xlu1 %1977 }
 0x5d5   : > { %v1980_v4 = vunpack.i.h.bf16 %v1978_v49  ;;  %v1979_v14 = vunpack.i.l.bf16 %v1978_v49 }
 0x5d7   : > { %v1348_v31 = vsel %vm1346_vm10, %v1345_v16, %v1980_v4  ;;  %v1347_v53 = vsel %vm1346_vm10, %v1344_v5, %v1979_v14 }
 0x5d8   : > { %v1983_v15 = vpop.permute.xlu1 %1982 }
 0x5d9   : > { %v1985_v38 = vunpack.i.h.bf16 %v1983_v15  ;;  %v1984_v52 = vunpack.i.l.bf16 %v1983_v15 }
 0x5db   : > { %v1351_v54 = vsel %vm1349_vm11, %v1348_v31, %v1985_v38  ;;  %v1350_v55 = vsel %vm1349_vm11, %v1347_v53, %v1984_v52 }
 0x5dc   : > { %v1352_v57 = vpack.c.bf16 %v1351_v54, %v1350_v55 }
 0x5de   : > { %1896 = vmatmul.mubr.msk.bf16.vlgmr.msra.gmra.mxu1 %vm579_vm0, %v1352_v57 }
 0x5df   : > { %1923 = vmatprep.mubr.msk.bf16.mxu1 %vm2069_vm2, %v2068_v13  ;;  %1908 = vmatpush3.bf16.msra.mxu1 %v1996_v26 }
 0x5e0   : > { %1909 = vmatprep.subr.bf16.mxu1 %v2068_v13 }
 0x5e3   : > { %1910 = vmatpush3.bf16.msra.mxu1 %v1997_v27 }
 0x5e4   : > { %1911 = vmatprep.subr.bf16.mxu1 %v2068_v13 }
 0x5e7   : > { %1912 = vmatpush3.bf16.msra.mxu1 %v1998_v28 }
 0x5e8   : > { %1913 = vmatprep.subr.bf16.mxu1 %v2068_v13 }
 0x5eb   : > { %1914 = vmatpush3.bf16.msra.mxu1 %v1999_v3 }
 0x5ec   : > { %1915 = vmatprep.subr.bf16.mxu1 %v2068_v13 }
 0x5ef   : > { %1916 = vmatpush3.bf16.msra.mxu1 %v2000_v29 }
 0x5f0   : > { %1917 = vmatprep.subr.bf16.mxu1 %v2068_v13 }
 0x5f3   : > { %1918 = vmatpush3.bf16.msra.mxu1 %v2001_v30 }
 0x5f4   : > { %1919 = vmatprep.subr.bf16.mxu1 %v2068_v13 }
 0x5f7   : > { %1920 = vmatpush3.bf16.msra.mxu1 %v2002_v32 }
 0x5f8   : > { %1921 = vmatprep.subr.bf16.mxu1 %v2068_v13 }
 0x5fb   : > { %1922 = vmatpush3.bf16.msra.mxu1 %v2003_v6 }
 0x69e   : > { %v1406_v61 = vpop.f32.mrf.mxu1 }
 0x69f   : > { %v1413_v62 = vadd.f32 %v1406_v61, %v2182_v0  ;;  %v1995_v0 = vld [vmem:[%s2525_s12] sm:$0xff]  }
 0x6a0   : > { %v1897_v8 = vpop.f32.mrf.mxu1  ;;  %1902 = vmatpush3.bf16.msra.mxu0 %v1995_v0 }
 0x6a1   : > { %v1416_v37 = vmul.f32 %v1413_v62, %v1413_v62 }
 0x6a2   : > { %v1409_v50 = vpop.f32.mrf.mxu1 }
 0x6a3   : > { %v1414_v33 = vadd.f32 %v1409_v50, %v2184_v2  ;;  %v1418_v7 = vsel %vm579_vm0, %v1416_v37, 0.0 }
 0x6a4   : > { %1419 = vadd.xlane.f32.xlu0 %v1418_v7  ;;  %v1898_v47 = vpop.f32.mrf.mxu1 }
 0x6a5   : > { %v1417_v9 = vmul.f32 %v1414_v33, %v1414_v33 }
 0x6a7   : > { %v1421_v10 = vsel %vm583_vm1, %v1417_v9, 0.0 }
 0x6a8   : > { %1422 = vadd.xlane.f32.xlu1 %v1421_v10 }
 0x72d   : > { %v1420_v2 = vpop.xlane.xlu0 %1419 }
 0x72e   : > { %v1424_v56 = vmul.f32 0.03125, %v1420_v2 }
 0x730   : > { %v1426_v58 = vadd.f32 1e-06, %v1424_v56 }
 0x731   : > { %v1423_v59 = vpop.xlane.xlu1 %1422 }
 0x732   : > { %2036 = vrsqrt.f32 %v1426_v58  ;;  %v1425_v17 = vmul.f32 0.03125, %v1423_v59 }
 0x734   : > { %v1427_v18 = vadd.f32 1e-06, %v1425_v17 }
 0x736   : > { %2038 = vrsqrt.f32 %v1427_v18 }
 0x73f   : > { %v2037_v19 = vpop.eup %2036 }
 0x740   : > { %v1430_v20 = vmul.f32 %v2037_v19, %v1413_v62 }
 0x742   : > { %v1438_v63 = vmul.f32 %v1790_v22, %v1430_v20 }
 0x743   : > { %v2039_v21 = vpop.eup %2038 }
 0x744   : > { %v1431_v23 = vmul.f32 %v2039_v21, %v1414_v33 }
 0x746   : > { %v1439_v24 = vmul.f32 %v1790_v22, %v1431_v23 }
 0x748   : > { %v1440_v25 = vpack.c.bf16 %v1439_v24, %v1438_v63 }
 0x74a   : > { %1904 = vmatmul.mubr.msk.bf16.vlgmr.msra.gmra.mxu0 %vm579_vm0, %v1440_v25 }
 0x80a   : > { %v1494_v34 = vpop.f32.mrf.mxu0 }
 0x80b   : > { %v1501_v35 = vmul.f32 %v1494_v34, %v1494_v34 }
 0x80c   : > { %v1905_v36 = vpop.f32.mrf.mxu0 }
 0x80d   : > { %v1503_v39 = vmul.f32 %v1501_v35, %v1494_v34 }
 0x80e   : > { %v1497_v60 = vpop.f32.mrf.mxu0 }
 0x80f   : > { %v1505_v40 = vmul.f32 0.044715, %v1503_v39  ;;  %v1502_v41 = vmul.f32 %v1497_v60, %v1497_v60 }
 0x810   : > { %v1906_v42 = vpop.f32.mrf.mxu0 }
 0x811   : > { %v1507_v43 = vadd.f32 %v1505_v40, %v1494_v34  ;;  %v1504_v44 = vmul.f32 %v1502_v41, %v1497_v60 }
 0x813   : > { %v1509_v45 = vmul.f32 0.7978846, %v1507_v43  ;;  %v1506_v11 = vmul.f32 0.044715, %v1504_v44 }
 0x815   : > { %2040 = vtanh.f32 %v1509_v45  ;;  %v1508_v13 = vadd.f32 %v1506_v11, %v1497_v60 }
 0x817   : > { %v1510_v46 = vmul.f32 0.7978846, %v1508_v13 }
 0x819   : > { %2042 = vtanh.f32 %v1510_v46 }
 0x822   : > { %v2041_v48 = vpop.eup %2040 }
 0x823   : > { %v1513_v49 = vadd.f32 1.0, %v2041_v48 }
 0x825   : > { %v1515_v1 = vmul.f32 0.5, %v1513_v49 }
 0x826   : > { %v2043_v51 = vpop.eup %2042 }
 0x827   : > { %v1514_v4 = vadd.f32 1.0, %v2043_v51  ;;  %v1517_v15 = vmul.f32 %v1515_v1, %v1494_v34 }
 0x829   : > { %v1516_v14 = vmul.f32 0.5, %v1514_v4 }
 0x82b   : > { %v1518_v16 = vmul.f32 %v1516_v14, %v1497_v60 }
 0x82d   : > { %v1519_v5 = vpack.c.bf16 %v1518_v16, %v1517_v15 }
 0x82f   : > { %1924 = vmatmul.mubr.bf16.vlgmr.msra.gmra.mxu1 %v1519_v5 }
 0x8ef   : > { %v1618_v38 = vpop.f32.mrf.mxu1 }
 0x8f0   : > { %1625 = vst.msk [vmem:[%s569_s20] sm:$0xff] %vm579_vm0, %v1618_v38 }
 0x8f1   : > { %v1925_v52 = vpop.f32.mrf.mxu1 }
 0x8f3   : > { %v1621_v31 = vpop.f32.mrf.mxu1 }
 0x8f4   : > { %1626 = vst.msk [vmem:[%s569_s20 + $0x8] sm:$0xf] %vm583_vm1, %v1621_v31 }
 0x8f5   : > { %v1926_v53 = vpop.f32.mrf.mxu1 }
 0x8f6 PF: > { %s24_s15 = sadd.s32 1, %s2066_s15   ;;  %s2528_s29 = smov %s2062_s30 }
 0x8f7   : > { %p21_p5 = scmp.ge.s32.totalorder %s24_s15, 4   ;;  %s2529_s30 = smov %s2531_s16 }
 0x8f9   :  { %23 = sbr.rel (!%p21_p5) target bundleno = 2 (0x2), region = 115 }

</bundles_post_ra>
